<compile_context>
chip_gen: v5e
topology: v5e:2x2
jax: 0.10.0
libtpu: 0.0.40
codegen_flags: <defaults>
</compile_context>

<pallas_src>
import jax
import jax.numpy as jnp
from jax.experimental import pallas as pl
from jax.experimental.pallas import tpu as pltpu

IN_DIM = 2048
HIDDEN = 256
OUT_DIM = 10
OUT_PAD = 128                    # lane-dense output width (>= OUT_DIM, multiple of 128)
TB_MAX = 1024                    # max batch tile (rows)
VMEM_LIMIT_BYTES = 28 * 1024 * 1024   # TB=1024 working set ~19-20 MiB; fits all gens


def _round_up(x, m):
    return (x + m - 1) // m * m


def _pick_tb(batch):
    """Batch tile: multiple of 8; ensures >= 2 grid steps whenever possible."""
    if batch > 2 * TB_MAX:
        return TB_MAX
    # Split into two roughly-equal tiles so v7x megacore gets both TensorCores busy.
    return max(8, _round_up(-(-batch // 2), 8))


def _mlp_kernel(x_ref, w1_ref, b1_ref, w2_ref, b2_ref, o_ref):
    # Layer 1: (TB, 2048) @ (2048, 256) on the MXU, bf16 inputs, f32 accumulate.
    x = x_ref[...]
    if x.dtype != jnp.bfloat16:           # static (trace-time) dtype check
        x = x.astype(jnp.bfloat16)
    h = jnp.dot(x, w1_ref[...], preferred_element_type=jnp.float32)
    # Bias + ReLU in f32 on the VPU (v5e has no bf16 VPU path).
    h = jnp.maximum(h + b1_ref[...], 0.0)
    # Layer 2: (TB, 256) @ (256, 128 padded) -> lane-dense (TB, 128) output block.
    out = jnp.dot(h.astype(jnp.bfloat16), w2_ref[...],
                  preferred_element_type=jnp.float32)
    o_ref[...] = (out + b2_ref[...]).astype(o_ref.dtype)


def prepare_params(w1, b1, w2, b2):
    """One-time parameter prep (call at init, NOT per forward).

    Weights are (in_features, out_features) == W.T of the PyTorch layout.
    Returns (w1_bf16, b1_f32[1,256], w2_bf16[256,128 padded], b2_f32[1,128 padded]).
    """
    w1_bf = w1.astype(jnp.bfloat16)
    w2_p = jnp.zeros((HIDDEN, OUT_PAD), jnp.bfloat16)
    w2_p = w2_p.at[:, :OUT_DIM].set(w2.astype(jnp.bfloat16))
    b1_2d = b1.reshape(1, HIDDEN).astype(jnp.float32)
    b2_p = jnp.zeros((1, OUT_PAD), jnp.float32)
    b2_p = b2_p.at[0, :OUT_DIM].set(b2.astype(jnp.float32))
    return w1_bf, b1_2d, w2_p, b2_p


def sat_img_net_forward(x, params, out_dtype=jnp.float32):
    """x: (B, 2048) f32 or bf16; params: output of prepare_params(). Returns (B, 10)."""
    w1_bf, b1_2d, w2_p, b2_p = params
    B = x.shape[0]
    if B == 0:
        return jnp.zeros((0, OUT_DIM), out_dtype)

    TB = _pick_tb(B)
    grid = (pl.cdiv(B, TB),)      # ragged last block handled by Pallas masking

    out_p = pl.pallas_call(
        _mlp_kernel,
        out_shape=jax.ShapeDtypeStruct((B, OUT_PAD), out_dtype),
        grid=grid,
        in_specs=[
            pl.BlockSpec((TB, IN_DIM), lambda i: (i, 0)),        # x: streams per tile
            pl.BlockSpec((IN_DIM, HIDDEN), lambda i: (0, 0)),    # w1: VMEM-resident
            pl.BlockSpec((1, HIDDEN), lambda i: (0, 0)),         # b1
            pl.BlockSpec((HIDDEN, OUT_PAD), lambda i: (0, 0)),   # w2 (lane-padded)
            pl.BlockSpec((1, OUT_PAD), lambda i: (0, 0)),        # b2 (lane-padded)
        ],
        out_specs=pl.BlockSpec((TB, OUT_PAD), lambda i: (i, 0)),
        compiler_params=pltpu.CompilerParams(
            dimension_semantics=("parallel",),                   # megacore on v7x
            vmem_limit_bytes=VMEM_LIMIT_BYTES),
    )(x, w1_bf, b1_2d, w2_p, b2_p)

    # Keep this slice: it discards the padded lanes (and any ragged-tile garbage
    # never reaches HBM because output writes are masked to B rows).
    return out_p[:, :OUT_DIM]


def init_params(key):
    """PyTorch nn.Linear default init: U[-1/sqrt(fan_in), 1/sqrt(fan_in)].

    Weights are stored as (in_features, out_features) == W.T of the PyTorch layout.
    """
    k1, k2, k3, k4 = jax.random.split(key, 4)
    bound1 = 1.0 / jnp.sqrt(jnp.float32(IN_DIM))
    bound2 = 1.0 / jnp.sqrt(jnp.float32(HIDDEN))
    w1 = jax.random.uniform(k1, (IN_DIM, HIDDEN), jnp.float32, -bound1, bound1)
    b1 = jax.random.uniform(k2, (HIDDEN,), jnp.float32, -bound1, bound1)
    w2 = jax.random.uniform(k3, (HIDDEN, OUT_DIM), jnp.float32, -bound2, bound2)
    b2 = jax.random.uniform(k4, (OUT_DIM,), jnp.float32, -bound2, bound2)
    return w1, b1, w2, b2


def _ref_bf16(x, w1, b1, w2, b2):
    """Same bf16-weight / f32-accumulate math in plain JAX (tight tolerance ref)."""
    h = jnp.maximum(
        jnp.dot(x.astype(jnp.bfloat16), w1.astype(jnp.bfloat16),
                preferred_element_type=jnp.float32) + b1, 0.0)
    return jnp.dot(h.astype(jnp.bfloat16), w2.astype(jnp.bfloat16),
                   preferred_element_type=jnp.float32) + b2


if __name__ == "__main__":
    key = jax.random.PRNGKey(0)
    k_x, k_x2, k_p = jax.random.split(key, 3)

    w1, b1, w2, b2 = init_params(k_p)
    # One-time parameter prep (hoisted out of the forward path).
    params = jax.tree_util.tree_map(jax.block_until_ready,
                                    prepare_params(w1, b1, w2, b2))

    fwd = jax.jit(sat_img_net_forward)

    # Small test batch (kernel tiles up to TB=1024 for large B).
    B = 8
    x = jax.random.normal(k_x, (B, IN_DIM), jnp.float32)
    out = jax.block_until_ready(fwd(x, params))
    assert out.shape == (B, OUT_DIM)

    ref_bf = _ref_bf16(x, w1, b1, w2, b2)
    assert jnp.allclose(out, ref_bf, atol=2e-3, rtol=2e-3)

    # Full-f32 semantics of the original module (loose tolerance documents the
    # bf16-weight inference error budget).
    ref_f32 = jnp.maximum(x @ w1 + b1, 0.0) @ w2 + b2
    assert jnp.allclose(out, ref_f32, atol=5e-2, rtol=5e-2)

    # Ragged-batch path: B not a multiple of the tile (TB=16, grid=2, last block
    # masked) — exercises the no-pad path that replaced the jnp.pad(x) copy.
    B2 = 24
    x2 = jax.random.normal(k_x2, (B2, IN_DIM), jnp.float32)
    out2 = jax.block_until_ready(fwd(x2, params))
    assert out2.shape == (B2, OUT_DIM)
    assert jnp.allclose(out2, _ref_bf16(x2, w1, b1, w2, b2), atol=2e-3, rtol=2e-3)

    print("KERNEL_OK")
</pallas_src>

<mosaic_0001>
module attributes {stable_mosaic.version = 11 : i64} {
  func.func @_mlp_kernel(%arg0: i32, %arg1: memref<8x2048xf32, #tpu.memory_space<vmem>>, %arg2: memref<2048x256xbf16, #tpu.memory_space<vmem>>, %arg3: memref<1x256xf32, #tpu.memory_space<vmem>>, %arg4: memref<256x128xbf16, #tpu.memory_space<vmem>>, %arg5: memref<1x128xf32, #tpu.memory_space<vmem>>, %arg6: memref<8x128xf32, #tpu.memory_space<vmem>>) attributes {dimension_semantics = [#tpu.dimension_semantics<parallel>], iteration_bounds = array<i64: 1>, scalar_prefetch = 0 : i64, scratch_operands = 0 : i64, tpu.core_type = #tpu.core_type<tc>, window_params = [{transform_indices = @transform_0, window_bounds = array<i64: 8, 2048>}, {pipeline_mode = #tpu.pipeline_mode<synchronous>, transform_indices = @transform_1, window_bounds = array<i64: 2048, 256>}, {pipeline_mode = #tpu.pipeline_mode<synchronous>, transform_indices = @transform_2, window_bounds = array<i64: 1, 256>}, {pipeline_mode = #tpu.pipeline_mode<synchronous>, transform_indices = @transform_3, window_bounds = array<i64: 256, 128>}, {pipeline_mode = #tpu.pipeline_mode<synchronous>, transform_indices = @transform_4, window_bounds = array<i64: 1, 128>}, {transform_indices = @transform_5, window_bounds = array<i64: 8, 128>}]} {
    %c0 = arith.constant 0 : index
    %c0_0 = arith.constant 0 : index
    %0 = vector.load %arg1[%c0, %c0_0] : memref<8x2048xf32, #tpu.memory_space<vmem>>, vector<8x2048xf32>
    %1 = arith.truncf %0 : vector<8x2048xf32> to vector<8x2048xbf16>
    %c0_1 = arith.constant 0 : index
    %c0_2 = arith.constant 0 : index
    %2 = vector.load %arg2[%c0_1, %c0_2] : memref<2048x256xbf16, #tpu.memory_space<vmem>>, vector<2048x256xbf16>
    %cst = arith.constant dense<0.000000e+00> : vector<8x256xf32>
    %3 = tpu.matmul %1, %2, %cst {dimension_numbers = #tpu.dot_dimension_numbers<[1], [0], [0], [1], [0, 0, 1, 1], [], []>} : vector<8x2048xbf16>, vector<2048x256xbf16>, vector<8x256xf32> -> vector<8x256xf32>
    %c0_3 = arith.constant 0 : index
    %c0_4 = arith.constant 0 : index
    %4 = vector.load %arg3[%c0_3, %c0_4] : memref<1x256xf32, #tpu.memory_space<vmem>>, vector<1x256xf32>
    %5 = vector.broadcast %4 : vector<1x256xf32> to vector<8x256xf32>
    %6 = arith.addf %3, %5 : vector<8x256xf32>
    %cst_5 = arith.constant 0.000000e+00 : f32
    %7 = vector.broadcast %cst_5 : f32 to vector<8x256xf32>
    %8 = arith.maximumf %6, %7 : vector<8x256xf32>
    %9 = arith.truncf %8 : vector<8x256xf32> to vector<8x256xbf16>
    %c0_6 = arith.constant 0 : index
    %c0_7 = arith.constant 0 : index
    %10 = vector.load %arg4[%c0_6, %c0_7] : memref<256x128xbf16, #tpu.memory_space<vmem>>, vector<256x128xbf16>
    %cst_8 = arith.constant dense<0.000000e+00> : vector<8x128xf32>
    %11 = tpu.matmul %9, %10, %cst_8 {dimension_numbers = #tpu.dot_dimension_numbers<[1], [0], [0], [1], [0, 0, 1, 1], [], []>} : vector<8x256xbf16>, vector<256x128xbf16>, vector<8x128xf32> -> vector<8x128xf32>
    %c0_9 = arith.constant 0 : index
    %c0_10 = arith.constant 0 : index
    %12 = vector.load %arg5[%c0_9, %c0_10] : memref<1x128xf32, #tpu.memory_space<vmem>>, vector<1x128xf32>
    %13 = vector.broadcast %12 : vector<1x128xf32> to vector<8x128xf32>
    %14 = arith.addf %11, %13 : vector<8x128xf32>
    %c0_11 = arith.constant 0 : index
    %c0_12 = arith.constant 0 : index
    %15 = vector.load %arg6[%c0_11, %c0_12] : memref<8x128xf32, #tpu.memory_space<vmem>>, vector<8x128xf32>
    tpu.vector_store %arg6[%c0_11, %c0_12], %14 {strides = array<i32>} : memref<8x128xf32, #tpu.memory_space<vmem>>, vector<8x128xf32>,
    return
  }
  func.func @transform_0(%arg0: i32) -> (i32, i32) {
    %c0_i32 = arith.constant 0 : i32
    %c0_i32_0 = arith.constant 0 : i32
    return %arg0, %c0_i32 : i32, i32
  }
  func.func @transform_1(%arg0: i32) -> (i32, i32) {
    %c0_i32 = arith.constant 0 : i32
    %c0_i32_0 = arith.constant 0 : i32
    %c0_i32_1 = arith.constant 0 : i32
    return %c0_i32, %c0_i32_0 : i32, i32
  }
  func.func @transform_2(%arg0: i32) -> (i32, i32) {
    %c0_i32 = arith.constant 0 : i32
    %c0_i32_0 = arith.constant 0 : i32
    %c0_i32_1 = arith.constant 0 : i32
    return %c0_i32, %c0_i32_0 : i32, i32
  }
  func.func @transform_3(%arg0: i32) -> (i32, i32) {
    %c0_i32 = arith.constant 0 : i32
    %c0_i32_0 = arith.constant 0 : i32
    %c0_i32_1 = arith.constant 0 : i32
    return %c0_i32, %c0_i32_0 : i32, i32
  }
  func.func @transform_4(%arg0: i32) -> (i32, i32) {
    %c0_i32 = arith.constant 0 : i32
    %c0_i32_0 = arith.constant 0 : i32
    %c0_i32_1 = arith.constant 0 : i32
    return %c0_i32, %c0_i32_0 : i32, i32
  }
  func.func @transform_5(%arg0: i32) -> (i32, i32) {
    %c0_i32 = arith.constant 0 : i32
    %c0_i32_0 = arith.constant 0 : i32
    return %arg0, %c0_i32 : i32, i32
  }
}

</mosaic_0001>

<bundles_post_ra>
// kernel: sat_img_net_forward.1
= control target key start
LH: loop header
LB: loop body
LE: loop exit
PB: predicated region body
PF: predicated region fallthrough
CT: control target
= control target key end

     0   :  { %10 = vsyncpa [#allocation3], 0  ;;  %s3902_s0 = inlined_call_operand.hbm [shape: f32[8,2048], index: 0, kind: input, shape index: {}]   ;;  %s3903_s1 = inlined_call_operand.hbm [shape: bf16[2048,256], index: 1, kind: input, shape index: {}]   ;;  %s3904_s2 = inlined_call_operand.hbm [shape: f32[1,256], index: 2, kind: input, shape index: {}]   ;;  %s3905_s3 = inlined_call_operand.hbm [shape: bf16[256,128], index: 3, kind: input, shape index: {}]   ;;  %s3906_s4 = inlined_call_operand.vmem [shape: f32[1,128], index: 4, kind: input, shape index: {}]   ;;  %s3907_s5 = inlined_call_operand.hbm [shape: f32[8,128], index: 5, kind: output, shape index: {}]  }
   0x1   :  { %11 = vsyncpa [#allocation6], 0 }
   0x2   :  { %12 = vsyncpa [#allocation9], 0  ;;  %s29_s20 = sshll.u32 %s3903_s1, 4  ;;  %s30_s20 = int_to_ptr.hbm [resolvable:$true] %s29_s20 }
   0x3   :  { %13 = vsyncpa [#allocation4], 0  ;;  %s3750_s21 = smov [#allocation5]   ;;  %s19_s25 = sshll.u32 %s3902_s0, 4  ;;  %s20_s25 = int_to_ptr.hbm [resolvable:$true] %s19_s25 }
   0x4   :  { %s31_s22 = sshll.u32 %s3750_s21, 4  ;;  %s3751_s26 = smov 128   ;;  %s32_s22 = int_to_ptr.vmem [resolvable:$true] %s31_s22 }
   0x5   :  { %s3752_s27 = smov 8   ;;  %s3753_s28 = smov [#allocation2]  }
   0x6   :  { %37 = dma.hbm_to_vmem [thread:$0]  %s30_s20, 32768, %s32_s22, [#allocation6], %s3751_s26, %s3751_s26, %s3752_s27  }
   0x7   :  { %s21_s29 = sshll.u32 %s3753_s28, 4  ;;  %s43_s7 = sshll.u32 %s3904_s2, 4  ;;  %s22_s29 = int_to_ptr.vmem [resolvable:$true] %s21_s29  ;;  %s44_s7 = int_to_ptr.hbm [resolvable:$true] %s43_s7 }
   0x8   :  { %24 = dma.hbm_to_vmem [thread:$0]  %s20_s25, 2048, %s22_s29, [#allocation3]  }
   0x9   :  { %s53_s9 = sshll.u32 %s3905_s3, 4  ;;  %s3754_s10 = smov [#allocation7]   ;;  %s54_s9 = int_to_ptr.hbm [resolvable:$true] %s53_s9 }
   0xa   :  { %s45_s11 = sshll.u32 %s3754_s10, 4  ;;  %s3755_s0 = smov [#allocation8]   ;;  %s46_s11 = int_to_ptr.vmem [resolvable:$true] %s45_s11 }
   0xb   :  { %48 = dma.hbm_to_vmem [thread:$0]  %s44_s7, 32, %s46_s11, [#allocation6]  }
   0xc   :  { %s55_s12 = sshll.u32 %s3755_s0, 4  ;;  %s3756_s13 = smov 64   ;;  %s56_s12 = int_to_ptr.vmem [resolvable:$true] %s55_s12 }
   0xd   :  { %s3757_s14 = smov 4  }
   0xe   :  { %61 = dma.hbm_to_vmem [thread:$0]  %s54_s9, 2048, %s56_s12, [#allocation9], %s3756_s13, %s3756_s13, %s3757_s14  }
   0xf   :  { %3742 = dma.done.wait [#allocation3], 2048  }
  0x10   :  { %3743 = vsyncadd [#allocation3], 4294965248 }
  0x11   :  { %3744 = dma.done.wait [#allocation6], 32800  }
  0x12   :  { %3745 = vsyncadd [#allocation6], 4294934496 }
  0x13   :  { %3746 = dma.done.wait [#allocation9], 2048  }
  0x14   :  { %3747 = vsyncadd [#allocation9], 4294965248  ;;  %v2310_v0 = vld [vmem:[#allocation5 + $0x70] sm:$0xf]  ;;  %v3355_v1 = vld [vmem:[#allocation5 + $0x74] sm:$0xf0] }
  0x15   :  { %v2374_v2 = vld [vmem:[#allocation5 + $0xf0] sm:$0xf]  ;;  %v2311_v3 = vor.u32 %v3355_v1, %v2310_v0  ;;  %v3371_v4 = vld [vmem:[#allocation5 + $0xf4] sm:$0xf0]  ;;  %v2302_v11 = vld [vmem:[#allocation5 + $0x60] sm:$0xf] }
  0x16   :  { %v2438_v5 = vld [vmem:[#allocation5 + $0x170] sm:$0xf]  ;;  %v3387_v6 = vld [vmem:[#allocation5 + $0x174] sm:$0xf0]  ;;  %v2375_v7 = vor.u32 %v3371_v4, %v2374_v2  ;;  %v3353_v13 = vld [vmem:[#allocation5 + $0x64] sm:$0xf0] }
  0x17   :  { %v2439_v8 = vor.u32 %v3387_v6, %v2438_v5  ;;  %v2502_v9 = vld [vmem:[#allocation5 + $0x1f0] sm:$0xf]  ;;  %v3403_v10 = vld [vmem:[#allocation5 + $0x1f4] sm:$0xf0]  ;;  %1654 = vmatpush.bf16.msra.mxu0 %v2311_v3  ;;  %v2366_v14 = vld [vmem:[#allocation5 + $0xe0] sm:$0xf]  ;;  %v2303_v16 = vor.u32 %v3353_v13, %v2302_v11 }
  0x18   :  { %v2503_v12 = vor.u32 %v3403_v10, %v2502_v9  ;;  %v3369_v15 = vld [vmem:[#allocation5 + $0xe4] sm:$0xf0]  ;;  %1667 = vmatpush.bf16.msra.mxu1 %v2375_v7  ;;  %v2430_v18 = vld [vmem:[#allocation5 + $0x160] sm:$0xf]  ;;  %v2294_v23 = vld [vmem:[#allocation5 + $0x50] sm:$0xf] }
  0x19   :  { %1680 = vmatpush.bf16.msra.mxu2 %v2439_v8  ;;  %v2367_v17 = vor.u32 %v3369_v15, %v2366_v14  ;;  %v3385_v19 = vld [vmem:[#allocation5 + $0x164] sm:$0xf0]  ;;  %v2494_v20 = vld [vmem:[#allocation5 + $0x1e0] sm:$0xf]  ;;  %v3351_v24 = vld [vmem:[#allocation5 + $0x54] sm:$0xf0] }
  0x1a   :  { %1693 = vmatpush.bf16.msra.mxu3 %v2503_v12  ;;  %v2431_v21 = vor.u32 %v3385_v19, %v2430_v18  ;;  %v3401_v22 = vld [vmem:[#allocation5 + $0x1e4] sm:$0xf0]  ;;  %v2358_v26 = vld [vmem:[#allocation5 + $0xd0] sm:$0xf]  ;;  %v3367_v27 = vld [vmem:[#allocation5 + $0xd4] sm:$0xf0]  ;;  %v2295_v29 = vor.u32 %v3351_v24, %v2294_v23 }
  0x1b   :  { %v2495_v25 = vor.u32 %v3401_v22, %v2494_v20  ;;  %v2422_v28 = vld [vmem:[#allocation5 + $0x150] sm:$0xf]  ;;  %1655 = vmatpush.bf16.msra.mxu0 %v2303_v16  ;;  %v3383_v30 = vld [vmem:[#allocation5 + $0x154] sm:$0xf0]  ;;  %v2359_v33 = vor.u32 %v3367_v27, %v2358_v26  ;;  %v2286_v35 = vld [vmem:[#allocation5 + $0x40] sm:$0xf] }
  0x1c   :  { %v2486_v31 = vld [vmem:[#allocation5 + $0x1d0] sm:$0xf]  ;;  %v3399_v32 = vld [vmem:[#allocation5 + $0x1d4] sm:$0xf0]  ;;  %1668 = vmatpush.bf16.msra.mxu1 %v2367_v17  ;;  %v2423_v34 = vor.u32 %v3383_v30, %v2422_v28  ;;  %v3349_v36 = vld [vmem:[#allocation5 + $0x44] sm:$0xf0] }
  0x1d   :  { %1681 = vmatpush.bf16.msra.mxu2 %v2431_v21  ;;  %v2350_v37 = vld [vmem:[#allocation5 + $0xc0] sm:$0xf]  ;;  %v2487_v38 = vor.u32 %v3399_v32, %v2486_v31  ;;  %v3365_v39 = vld [vmem:[#allocation5 + $0xc4] sm:$0xf0]  ;;  %v2287_v44 = vor.u32 %v3349_v36, %v2286_v35  ;;  %v2278_v47 = vld [vmem:[#allocation5 + $0x30] sm:$0xf] }
  0x1e   :  { %1694 = vmatpush.bf16.msra.mxu3 %v2495_v25  ;;  %v2414_v40 = vld [vmem:[#allocation5 + $0x140] sm:$0xf]  ;;  %v3381_v41 = vld [vmem:[#allocation5 + $0x144] sm:$0xf0]  ;;  %v2351_v45 = vor.u32 %v3365_v39, %v2350_v37  ;;  %v3347_v48 = vld [vmem:[#allocation5 + $0x34] sm:$0xf0] }
  0x1f   :  { %v2478_v42 = vld [vmem:[#allocation5 + $0x1c0] sm:$0xf]  ;;  %v3397_v43 = vld [vmem:[#allocation5 + $0x1c4] sm:$0xf0]  ;;  %1656 = vmatpush.bf16.msra.mxu0 %v2295_v29  ;;  %v2415_v46 = vor.u32 %v3381_v41, %v2414_v40  ;;  %v2342_v49 = vld [vmem:[#allocation5 + $0xb0] sm:$0xf]  ;;  %v2279_v56 = vor.u32 %v3347_v48, %v2278_v47 }
  0x20   :  { %1669 = vmatpush.bf16.msra.mxu1 %v2359_v33  ;;  %v2479_v50 = vor.u32 %v3397_v43, %v2478_v42  ;;  %v3363_v51 = vld [vmem:[#allocation5 + $0xb4] sm:$0xf0]  ;;  %v2406_v52 = vld [vmem:[#allocation5 + $0x130] sm:$0xf]  ;;  %v2270_v59 = vld [vmem:[#allocation5 + $0x20] sm:$0xf] }
  0x21   :  { %1682 = vmatpush.bf16.msra.mxu2 %v2423_v34  ;;  %v3379_v53 = vld [vmem:[#allocation5 + $0x134] sm:$0xf0]  ;;  %v2470_v54 = vld [vmem:[#allocation5 + $0x1b0] sm:$0xf]  ;;  %v2343_v57 = vor.u32 %v3363_v51, %v2342_v49  ;;  %v3345_v60 = vld [vmem:[#allocation5 + $0x24] sm:$0xf0] }
  0x22   :  { %1695 = vmatpush.bf16.msra.mxu3 %v2487_v38  ;;  %v3395_v55 = vld [vmem:[#allocation5 + $0x1b4] sm:$0xf0]  ;;  %v2407_v58 = vor.u32 %v3379_v53, %v2406_v52  ;;  %v2334_v61 = vld [vmem:[#allocation5 + $0xa0] sm:$0xf]  ;;  %v3361_v63 = vld [vmem:[#allocation5 + $0xa4] sm:$0xf0]  ;;  %v2271_v4 = vor.u32 %v3345_v60, %v2270_v59 }
  0x23   :  { %1657 = vmatpush.bf16.msra.mxu0 %v2287_v44  ;;  %v2471_v62 = vor.u32 %v3395_v55, %v2470_v54  ;;  %v2398_v0 = vld [vmem:[#allocation5 + $0x120] sm:$0xf]  ;;  %v3377_v1 = vld [vmem:[#allocation5 + $0x124] sm:$0xf0]  ;;  %v2335_v5 = vor.u32 %v3361_v63, %v2334_v61  ;;  %v2262_v7 = vld [vmem:[#allocation5 + $0x10] sm:$0xf] }
  0x24   :  { %1670 = vmatpush.bf16.msra.mxu1 %v2351_v45  ;;  %v2462_v2 = vld [vmem:[#allocation5 + $0x1a0] sm:$0xf]  ;;  %v3393_v3 = vld [vmem:[#allocation5 + $0x1a4] sm:$0xf0]  ;;  %v2399_v6 = vor.u32 %v3377_v1, %v2398_v0  ;;  %v3343_v8 = vld [vmem:[#allocation5 + $0x14] sm:$0xf0] }
  0x25   :  { %1683 = vmatpush.bf16.msra.mxu2 %v2415_v46  ;;  %v2326_v9 = vld [vmem:[#allocation5 + $0x90] sm:$0xf]  ;;  %v2463_v10 = vor.u32 %v3393_v3, %v2462_v2  ;;  %v3359_v11 = vld [vmem:[#allocation5 + $0x94] sm:$0xf0]  ;;  %v2263_v16 = vor.u32 %v3343_v8, %v2262_v7  ;;  %v2254_v17 = vld [vmem:[#allocation5] sm:$0xf] }
  0x26   :  { %1696 = vmatpush.bf16.msra.mxu3 %v2479_v50  ;;  %v2390_v12 = vld [vmem:[#allocation5 + $0x110] sm:$0xf]  ;;  %v3375_v13 = vld [vmem:[#allocation5 + $0x114] sm:$0xf0]  ;;  %v3341_v18 = vld [vmem:[#allocation5 + $0x4] sm:$0xf0]  ;;  %v2327_v19 = vor.u32 %v3359_v11, %v2326_v9 }
  0x27   :  { %1658 = vmatpush.bf16.msra.mxu0 %v2279_v56  ;;  %v2454_v14 = vld [vmem:[#allocation5 + $0x190] sm:$0xf]  ;;  %v3391_v15 = vld [vmem:[#allocation5 + $0x194] sm:$0xf0]  ;;  %v2391_v20 = vor.u32 %v3375_v13, %v2390_v12  ;;  %v2318_v21 = vld [vmem:[#allocation5 + $0x80] sm:$0xf]  ;;  %v2255_v31 = vor.u32 %v3341_v18, %v2254_v17 }
  0x28   :  { %1671 = vmatpush.bf16.msra.mxu1 %v2343_v57  ;;  %v3357_v22 = vld [vmem:[#allocation5 + $0x84] sm:$0xf0]  ;;  %v2382_v23 = vld [vmem:[#allocation5 + $0x100] sm:$0xf]  ;;  %v2455_v24 = vor.u32 %v3391_v15, %v2454_v14  ;;  %v2566_v28 = vld [vmem:[#allocation5 + $0x270] sm:$0xf] }
  0x29   :  { %1684 = vmatpush.bf16.msra.mxu2 %v2407_v58  ;;  %v3373_v25 = vld [vmem:[#allocation5 + $0x104] sm:$0xf0]  ;;  %v2446_v26 = vld [vmem:[#allocation5 + $0x180] sm:$0xf]  ;;  %v3419_v29 = vld [vmem:[#allocation5 + $0x274] sm:$0xf0]  ;;  %v2319_v35 = vor.u32 %v3357_v22, %v2318_v21 }
  0x2a   :  { %1697 = vmatpush.bf16.msra.mxu3 %v2471_v62  ;;  %v3389_v27 = vld [vmem:[#allocation5 + $0x184] sm:$0xf0]  ;;  %v2630_v30 = vld [vmem:[#allocation5 + $0x2f0] sm:$0xf]  ;;  %v3435_v32 = vld [vmem:[#allocation5 + $0x2f4] sm:$0xf0]  ;;  %v2383_v36 = vor.u32 %v3373_v25, %v2382_v23  ;;  %v2567_v40 = vor.u32 %v3419_v29, %v2566_v28 }
  0x2b   :  { %1659 = vmatpush.bf16.msra.mxu0 %v2271_v4  ;;  %v2694_v33 = vld [vmem:[#allocation5 + $0x370] sm:$0xf]  ;;  %v3451_v34 = vld [vmem:[#allocation5 + $0x374] sm:$0xf0]  ;;  %v2447_v39 = vor.u32 %v3389_v27, %v2446_v26  ;;  %v2631_v41 = vor.u32 %v3435_v32, %v2630_v30  ;;  %v2558_v43 = vld [vmem:[#allocation5 + $0x260] sm:$0xf] }
  0x2c   :  { %1672 = vmatpush.bf16.msra.mxu1 %v2335_v5  ;;  %v2758_v37 = vld [vmem:[#allocation5 + $0x3f0] sm:$0xf]  ;;  %v3467_v38 = vld [vmem:[#allocation5 + $0x3f4] sm:$0xf0]  ;;  %v2695_v42 = vor.u32 %v3451_v34, %v2694_v33  ;;  %v3417_v44 = vld [vmem:[#allocation5 + $0x264] sm:$0xf0] }
  0x2d   :  { %1685 = vmatpush.bf16.msra.mxu2 %v2399_v6  ;;  %v2622_v45 = vld [vmem:[#allocation5 + $0x2e0] sm:$0xf]  ;;  %v2759_v46 = vor.u32 %v3467_v38, %v2758_v37  ;;  %v3433_v47 = vld [vmem:[#allocation5 + $0x2e4] sm:$0xf0]  ;;  %v2559_v52 = vor.u32 %v3417_v44, %v2558_v43  ;;  %v2550_v53 = vld [vmem:[#allocation5 + $0x250] sm:$0xf] }
  0x2e   :  { %1698 = vmatpush.bf16.msra.mxu3 %v2463_v10  ;;  %v2686_v48 = vld [vmem:[#allocation5 + $0x360] sm:$0xf]  ;;  %v3449_v49 = vld [vmem:[#allocation5 + $0x364] sm:$0xf0]  ;;  %v2623_v54 = vor.u32 %v3433_v47, %v2622_v45  ;;  %v3415_v56 = vld [vmem:[#allocation5 + $0x254] sm:$0xf0] }
  0x2f   :  { %1660 = vmatpush.bf16.msra.mxu0 %v2263_v16  ;;  %v2750_v50 = vld [vmem:[#allocation5 + $0x3e0] sm:$0xf]  ;;  %v3465_v51 = vld [vmem:[#allocation5 + $0x3e4] sm:$0xf0]  ;;  %v2687_v55 = vor.u32 %v3449_v49, %v2686_v48  ;;  %v2614_v57 = vld [vmem:[#allocation5 + $0x2d0] sm:$0xf]  ;;  %v2551_v0 = vor.u32 %v3415_v56, %v2550_v53 }
  0x30   :  { %1673 = vmatpush.bf16.msra.mxu1 %v2327_v19  ;;  %v3431_v58 = vld [vmem:[#allocation5 + $0x2d4] sm:$0xf0]  ;;  %v2751_v59 = vor.u32 %v3465_v51, %v2750_v50  ;;  %v2678_v60 = vld [vmem:[#allocation5 + $0x350] sm:$0xf]  ;;  %v2542_v2 = vld [vmem:[#allocation5 + $0x240] sm:$0xf] }
  0x31   :  { %1686 = vmatpush.bf16.msra.mxu2 %v2391_v20  ;;  %v3447_v61 = vld [vmem:[#allocation5 + $0x354] sm:$0xf0]  ;;  %v2742_v62 = vld [vmem:[#allocation5 + $0x3d0] sm:$0xf]  ;;  %v2615_v1 = vor.u32 %v3431_v58, %v2614_v57  ;;  %v80_v4 = vld [vmem:[#allocation2] sm:$0xff]  ;;  %s3758_s15 = smov [#allocation10]  }
  0x32   :  { %1699 = vmatpush.bf16.msra.mxu3 %v2455_v24  ;;  %v3463_v63 = vld [vmem:[#allocation5 + $0x3d4] sm:$0xf0]  ;;  %v82_v3 = vld [vmem:[#allocation2 + $0x10] sm:$0xff]  ;;  %v2679_v5 = vor.u32 %v3447_v61, %v2678_v60  ;;  %v3413_v6 = vld [vmem:[#allocation5 + $0x244] sm:$0xf0]  ;;  %v3803_v9 = vpack.c.bf16 %v80_v4, %v80_v4  ;;  %s2238_s16 = sshll.u32 %s3758_s15, 4  ;;  %s2239_s16 = int_to_ptr.vmem [resolvable:$true] %s2238_s16 }
  0x33   :  { %1661 = vmatpush.bf16.msra.mxu0 %v2255_v31  ;;  %v2606_v7 = vld [vmem:[#allocation5 + $0x2c0] sm:$0xf]  ;;  %v3801_v8 = vpack.c.bf16 %v82_v3, %v82_v3  ;;  %v83_v10 = vld [vmem:[#allocation2 + $0x18] sm:$0xff]  ;;  %v2743_v11 = vor.u32 %v3463_v63, %v2742_v62  ;;  %v3429_v12 = vld [vmem:[#allocation5 + $0x2c4] sm:$0xf0]  ;;  %v2543_v18 = vor.u32 %v3413_v6, %v2542_v2  ;;  %s2240_s19 = sshll.u32 %s3907_s5, 4  ;;  %s2241_s19 = int_to_ptr.hbm [resolvable:$true] %s2240_s19 }
  0x34   :  { %1674 = vmatpush.bf16.msra.mxu1 %v2319_v35  ;;  %v2670_v13 = vld [vmem:[#allocation5 + $0x340] sm:$0xf]  ;;  %v3445_v14 = vld [vmem:[#allocation5 + $0x344] sm:$0xf0]  ;;  %v3805_v15 = vpack.c.bf16 %v83_v10, %v83_v10  ;;  %v2607_v20 = vor.u32 %v3429_v12, %v2606_v7  ;;  %v2534_v22 = vld [vmem:[#allocation5 + $0x230] sm:$0xf] }
  0x35   :  { %1687 = vmatpush.bf16.msra.mxu2 %v2383_v36  ;;  %v2734_v16 = vld [vmem:[#allocation5 + $0x3c0] sm:$0xf]  ;;  %v3461_v17 = vld [vmem:[#allocation5 + $0x3c4] sm:$0xf0]  ;;  %v2671_v21 = vor.u32 %v3445_v14, %v2670_v13  ;;  %v3411_v23 = vld [vmem:[#allocation5 + $0x234] sm:$0xf0] }
  0x36   :  { %1700 = vmatpush.bf16.msra.mxu3 %v2447_v39  ;;  %1662 = vmatmul.bf16.vlgmr.msra.gmra.mxu0 %v3803_v9  ;;  %v81_v19 = vld [vmem:[#allocation2 + $0x8] sm:$0xff]  ;;  %v2598_v24 = vld [vmem:[#allocation5 + $0x2b0] sm:$0xf]  ;;  %v2735_v26 = vor.u32 %v3461_v17, %v2734_v16  ;;  %v3427_v27 = vld [vmem:[#allocation5 + $0x2b4] sm:$0xf0]  ;;  %v2535_v32 = vor.u32 %v3411_v23, %v2534_v22 }
  0x37   :  { %1706 = vmatpush.bf16.msrb.mxu0 %v2567_v40  ;;  %v3810_v25 = vpack.c.bf16 %v81_v19, %v81_v19  ;;  %v2662_v28 = vld [vmem:[#allocation5 + $0x330] sm:$0xf]  ;;  %v3443_v29 = vld [vmem:[#allocation5 + $0x334] sm:$0xf0]  ;;  %v2599_v33 = vor.u32 %v3427_v27, %v2598_v24  ;;  %v2526_v35 = vld [vmem:[#allocation5 + $0x220] sm:$0xf] }
  0x38   :  { %1719 = vmatpush.bf16.msrb.mxu1 %v2631_v41  ;;  %1688 = vmatmul.bf16.vlgmr.msra.gmra.mxu2 %v3801_v8  ;;  %v2726_v30 = vld [vmem:[#allocation5 + $0x3b0] sm:$0xf]  ;;  %v3459_v31 = vld [vmem:[#allocation5 + $0x3b4] sm:$0xf0]  ;;  %v2663_v34 = vor.u32 %v3443_v29, %v2662_v28  ;;  %v3409_v36 = vld [vmem:[#allocation5 + $0x224] sm:$0xf0] }
  0x39   :  { %1732 = vmatpush.bf16.msrb.mxu2 %v2695_v42  ;;  %1701 = vmatmul.bf16.vlgmr.msra.gmra.mxu3 %v3805_v15  ;;  %v2590_v37 = vld [vmem:[#allocation5 + $0x2a0] sm:$0xf]  ;;  %v2727_v38 = vor.u32 %v3459_v31, %v2726_v30  ;;  %v3425_v39 = vld [vmem:[#allocation5 + $0x2a4] sm:$0xf0]  ;;  %v2527_v44 = vor.u32 %v3409_v36, %v2526_v35  ;;  %v2518_v47 = vld [vmem:[#allocation5 + $0x210] sm:$0xf] }
  0x3a   :  { %1745 = vmatpush.bf16.msrb.mxu3 %v2759_v46  ;;  %1675 = vmatmul.bf16.vlgmr.msra.gmra.mxu1 %v3810_v25  ;;  %v2654_v40 = vld [vmem:[#allocation5 + $0x320] sm:$0xf]  ;;  %v3441_v41 = vld [vmem:[#allocation5 + $0x324] sm:$0xf0]  ;;  %v2591_v45 = vor.u32 %v3425_v39, %v2590_v37  ;;  %v3407_v48 = vld [vmem:[#allocation5 + $0x214] sm:$0xf0] }
  0x3b   :  { %1707 = vmatpush.bf16.msrb.mxu0 %v2559_v52  ;;  %v2718_v42 = vld [vmem:[#allocation5 + $0x3a0] sm:$0xf]  ;;  %v3457_v43 = vld [vmem:[#allocation5 + $0x3a4] sm:$0xf0]  ;;  %v2655_v46 = vor.u32 %v3441_v41, %v2654_v40  ;;  %v2582_v49 = vld [vmem:[#allocation5 + $0x290] sm:$0xf]  ;;  %v2519_v56 = vor.u32 %v3407_v48, %v2518_v47 }
  0x3c   :  { %1720 = vmatpush.bf16.msrb.mxu1 %v2623_v54  ;;  %v2719_v50 = vor.u32 %v3457_v43, %v2718_v42  ;;  %v3423_v51 = vld [vmem:[#allocation5 + $0x294] sm:$0xf0]  ;;  %v2646_v52 = vld [vmem:[#allocation5 + $0x310] sm:$0xf]  ;;  %v2510_v57 = vld [vmem:[#allocation5 + $0x200] sm:$0xf] }
  0x3d   :  { %1733 = vmatpush.bf16.msrb.mxu2 %v2687_v55  ;;  %v3439_v53 = vld [vmem:[#allocation5 + $0x314] sm:$0xf0]  ;;  %v2710_v54 = vld [vmem:[#allocation5 + $0x390] sm:$0xf]  ;;  %v3405_v58 = vld [vmem:[#allocation5 + $0x204] sm:$0xf0] }
  0x3e   :  { %1746 = vmatpush.bf16.msrb.mxu3 %v2751_v59  ;;  %v3455_v55 = vld [vmem:[#allocation5 + $0x394] sm:$0xf0]  ;;  %v2583_v59 = vor.u32 %v3423_v51, %v2582_v49  ;;  %v2647_v60 = vor.u32 %v3439_v53, %v2646_v52  ;;  %v2574_v61 = vld [vmem:[#allocation5 + $0x280] sm:$0xf]  ;;  %v3421_v62 = vld [vmem:[#allocation5 + $0x284] sm:$0xf0]  ;;  %v2511_v7 = vor.u32 %v3405_v58, %v2510_v57 }
  0x3f   :  { %1708 = vmatpush.bf16.msrb.mxu0 %v2551_v0  ;;  %v2638_v63 = vld [vmem:[#allocation5 + $0x300] sm:$0xf]  ;;  %v2711_v0 = vor.u32 %v3455_v55, %v2710_v54  ;;  %v3453_v3 = vld [vmem:[#allocation5 + $0x384] sm:$0xf0]  ;;  %v2822_v4 = vld [vmem:[#allocation5 + $0x470] sm:$0xf]  ;;  %v2575_v13 = vor.u32 %v3421_v62, %v2574_v61 }
  0x40   :  { %1721 = vmatpush.bf16.msrb.mxu1 %v2615_v1  ;;  %v3437_v1 = vld [vmem:[#allocation5 + $0x304] sm:$0xf0]  ;;  %v2702_v2 = vld [vmem:[#allocation5 + $0x380] sm:$0xf]  ;;  %v2886_v6 = vld [vmem:[#allocation5 + $0x4f0] sm:$0xf] }
  0x41   :  { %1734 = vmatpush.bf16.msrb.mxu2 %v2679_v5  ;;  %v3483_v5 = vld [vmem:[#allocation5 + $0x474] sm:$0xf0]  ;;  %v2639_v14 = vor.u32 %v3437_v1, %v2638_v63  ;;  %v3014_v16 = vld [vmem:[#allocation5 + $0x5f0] sm:$0xf]  ;;  %v2703_v19 = vor.u32 %v3453_v3, %v2702_v2  ;;  %v84_v22 = vld [vmem:[#allocation2 + $0x20] sm:$0xff] }
  0x42   :  { %1747 = vmatpush.bf16.msrb.mxu3 %v2743_v11  ;;  %v3499_v10 = vld [vmem:[#allocation5 + $0x4f4] sm:$0xf0]  ;;  %v2950_v11 = vld [vmem:[#allocation5 + $0x570] sm:$0xf]  ;;  %v3481_v27 = vld [vmem:[#allocation5 + $0x464] sm:$0xf0]  ;;  %v3815_v37 = vpack.c.bf16 %v84_v22, %v84_v22 }
  0x43   :  { %1709 = vmatpush.bf16.msrb.mxu0 %v2543_v18  ;;  %v3515_v12 = vld [vmem:[#allocation5 + $0x574] sm:$0xf0]  ;;  %v86_v18 = vld [vmem:[#allocation2 + $0x30] sm:$0xff]  ;;  %v2887_v24 = vor.u32 %v3499_v10, %v2886_v6  ;;  %v2878_v28 = vld [vmem:[#allocation5 + $0x4e0] sm:$0xf] }
  0x44   :  { %1722 = vmatpush.bf16.msrb.mxu1 %v2607_v20  ;;  %v3531_v17 = vld [vmem:[#allocation5 + $0x5f4] sm:$0xf0]  ;;  %v2823_v20 = vor.u32 %v3483_v5, %v2822_v4  ;;  %v85_v29 = vld [vmem:[#allocation2 + $0x28] sm:$0xff]  ;;  %v3006_v35 = vld [vmem:[#allocation5 + $0x5e0] sm:$0xf] }
  0x45   :  { %1735 = vmatpush.bf16.msrb.mxu2 %v2671_v21  ;;  %v2814_v21 = vld [vmem:[#allocation5 + $0x460] sm:$0xf]  ;;  %v87_v23 = vld [vmem:[#allocation2 + $0x38] sm:$0xff]  ;;  %v3015_v30 = vor.u32 %v3531_v17, %v3014_v16  ;;  %v3497_v31 = vld [vmem:[#allocation5 + $0x4e4] sm:$0xf0]  ;;  %v3819_v40 = vpack.c.bf16 %v85_v29, %v85_v29 }
  0x46   :  { %1748 = vmatpush.bf16.msrb.mxu3 %v2735_v26  ;;  %v2951_v26 = vor.u32 %v3515_v12, %v2950_v11  ;;  %v3529_v36 = vld [vmem:[#allocation5 + $0x5e4] sm:$0xf0]  ;;  %v2815_v39 = vor.u32 %v3481_v27, %v2814_v21  ;;  %v2879_v41 = vor.u32 %v3497_v31, %v2878_v28  ;;  %v2806_v43 = vld [vmem:[#allocation5 + $0x450] sm:$0xf]  ;;  %v3495_v47 = vld [vmem:[#allocation5 + $0x4d4] sm:$0xf0] }
  0x47   :  { %1710 = vmatpush.bf16.msrb.mxu0 %v2535_v32  ;;  %v2942_v32 = vld [vmem:[#allocation5 + $0x560] sm:$0xf]  ;;  %v2934_v48 = vld [vmem:[#allocation5 + $0x550] sm:$0xf]  ;;  %v3511_v49 = vld [vmem:[#allocation5 + $0x554] sm:$0xf0] }
  0x48   :  { %1723 = vmatpush.bf16.msrb.mxu1 %v2599_v33  ;;  %v3513_v33 = vld [vmem:[#allocation5 + $0x564] sm:$0xf0]  ;;  %v3527_v51 = vld [vmem:[#allocation5 + $0x5d4] sm:$0xf0]  ;;  %v2935_v54 = vor.u32 %v3511_v49, %v2934_v48  ;;  %v2798_v55 = vld [vmem:[#allocation5 + $0x440] sm:$0xf] }
  0x49   :  { %1736 = vmatpush.bf16.msrb.mxu2 %v2663_v34  ;;  %v3813_v34 = vpack.c.bf16 %v86_v18, %v86_v18  ;;  %v2943_v42 = vor.u32 %v3513_v33, %v2942_v32  ;;  %v2862_v57 = vld [vmem:[#allocation5 + $0x4c0] sm:$0xf]  ;;  %v3509_v61 = vld [vmem:[#allocation5 + $0x544] sm:$0xf0]  ;;  %v2790_v3 = vld [vmem:[#allocation5 + $0x430] sm:$0xf] }
  0x4a   :  { %1749 = vmatpush.bf16.msrb.mxu3 %v2727_v38  ;;  %v3817_v38 = vpack.c.bf16 %v87_v23, %v87_v23  ;;  %v2990_v62 = vld [vmem:[#allocation5 + $0x5c0] sm:$0xf]  ;;  %v3525_v63 = vld [vmem:[#allocation5 + $0x5c4] sm:$0xf0]  ;;  %v3475_v4 = vld [vmem:[#allocation5 + $0x434] sm:$0xf0] }
  0x4b   :  { %1711 = vmatpush.bf16.msrb.mxu0 %v2527_v44  ;;  %v3479_v44 = vld [vmem:[#allocation5 + $0x454] sm:$0xf0]  ;;  %v2854_v5 = vld [vmem:[#allocation5 + $0x4b0] sm:$0xf]  ;;  %v2991_v6 = vor.u32 %v3525_v63, %v2990_v62  ;;  %v2782_v18 = vld [vmem:[#allocation5 + $0x420] sm:$0xf] }
  0x4c   :  { %1724 = vmatpush.bf16.msrb.mxu1 %v2591_v45  ;;  %v2870_v45 = vld [vmem:[#allocation5 + $0x4d0] sm:$0xf]  ;;  %v2807_v52 = vor.u32 %v3479_v44, %v2806_v43  ;;  %v3507_v11 = vld [vmem:[#allocation5 + $0x534] sm:$0xf0]  ;;  %v3489_v22 = vld [vmem:[#allocation5 + $0x4a4] sm:$0xf0] }
  0x4d   :  { %1737 = vmatpush.bf16.msrb.mxu2 %v2655_v46  ;;  %v3007_v46 = vor.u32 %v3529_v36, %v3006_v35  ;;  %v2871_v53 = vor.u32 %v3495_v47, %v2870_v45  ;;  %v2918_v10 = vld [vmem:[#allocation5 + $0x530] sm:$0xf]  ;;  %v2910_v23 = vld [vmem:[#allocation5 + $0x520] sm:$0xf]  ;;  %v3521_v27 = vld [vmem:[#allocation5 + $0x5a4] sm:$0xf0] }
  0x4e   :  { %1750 = vmatpush.bf16.msrb.mxu3 %v2719_v50  ;;  %v2998_v50 = vld [vmem:[#allocation5 + $0x5d0] sm:$0xf]  ;;  %v2919_v17 = vor.u32 %v3507_v11, %v2918_v10  ;;  %v3471_v32 = vld [vmem:[#allocation5 + $0x414] sm:$0xf0]  ;;  %v2766_v45 = vld [vmem:[#allocation5 + $0x400] sm:$0xf] }
  0x4f   :  { %1712 = vmatpush.bf16.msrb.mxu0 %v2519_v56  ;;  %v3477_v56 = vld [vmem:[#allocation5 + $0x444] sm:$0xf0]  ;;  %v2999_v58 = vor.u32 %v3527_v51, %v2998_v50  ;;  %v2982_v12 = vld [vmem:[#allocation5 + $0x5b0] sm:$0xf]  ;;  %v3487_v36 = vld [vmem:[#allocation5 + $0x494] sm:$0xf0] }
  0x50   :  { %1725 = vmatpush.bf16.msrb.mxu1 %v2583_v59  ;;  %v3493_v59 = vld [vmem:[#allocation5 + $0x4c4] sm:$0xf0]  ;;  %v2774_v31 = vld [vmem:[#allocation5 + $0x410] sm:$0xf]  ;;  %v3519_v43 = vld [vmem:[#allocation5 + $0x594] sm:$0xf0] }
  0x51   :  { %1738 = vmatpush.bf16.msrb.mxu2 %v2647_v60  ;;  %v2926_v60 = vld [vmem:[#allocation5 + $0x540] sm:$0xf]  ;;  %v2863_v1 = vor.u32 %v3493_v59, %v2862_v57  ;;  %v2838_v33 = vld [vmem:[#allocation5 + $0x490] sm:$0xf]  ;;  %v2775_v44 = vor.u32 %v3471_v32, %v2774_v31  ;;  %v3485_v50 = vld [vmem:[#allocation5 + $0x484] sm:$0xf0] }
  0x52   :  { %1751 = vmatpush.bf16.msrb.mxu3 %v2711_v0  ;;  %v2799_v0 = vor.u32 %v3477_v56, %v2798_v55  ;;  %v2927_v2 = vor.u32 %v3509_v61, %v2926_v60  ;;  %v2830_v47 = vld [vmem:[#allocation5 + $0x480] sm:$0xf]  ;;  %v2839_v48 = vor.u32 %v3487_v36, %v2838_v33  ;;  %v3517_v55 = vld [vmem:[#allocation5 + $0x584] sm:$0xf0]  ;;  %v3078_v56 = vld [vmem:[#allocation5 + $0x670] sm:$0xf] }
  0x53   :  { %1713 = vmatpush.bf16.msrb.mxu0 %v2511_v7  ;;  %v3491_v7 = vld [vmem:[#allocation5 + $0x4b4] sm:$0xf0]  ;;  %v2894_v51 = vld [vmem:[#allocation5 + $0x500] sm:$0xf]  ;;  %v3206_v61 = vld [vmem:[#allocation5 + $0x770] sm:$0xf]  ;;  %v2831_v63 = vor.u32 %v3485_v50, %v2830_v47 }
  0x54   :  { %1726 = vmatpush.bf16.msrb.mxu1 %v2575_v13  ;;  %v3523_v13 = vld [vmem:[#allocation5 + $0x5b4] sm:$0xf0]  ;;  %v2855_v16 = vor.u32 %v3491_v7, %v2854_v5  ;;  %v89_v7 = vld [vmem:[#allocation2 + $0x48] sm:$0xff]  ;;  %v3062_v31 = vld [vmem:[#allocation5 + $0x650] sm:$0xf] }
  0x55   :  { %1739 = vmatpush.bf16.msrb.mxu2 %v2639_v14  ;;  %v2791_v14 = vor.u32 %v3475_v4, %v2790_v3  ;;  %v2983_v21 = vor.u32 %v3523_v13, %v2982_v12  ;;  %v3547_v57 = vld [vmem:[#allocation5 + $0x674] sm:$0xf0]  ;;  %v88_v3 = vld [vmem:[#allocation2 + $0x40] sm:$0xff]  ;;  %v3126_v33 = vld [vmem:[#allocation5 + $0x6d0] sm:$0xf] }
  0x56   :  { %1752 = vmatpush.bf16.msrb.mxu3 %v2703_v19  ;;  %1714 = vmatmul.bf16.vlgmr.msrb.gmra.mxu0 %v3815_v37  ;;  %v3473_v19 = vld [vmem:[#allocation5 + $0x424] sm:$0xf0]  ;;  %v3563_v60 = vld [vmem:[#allocation5 + $0x6f4] sm:$0xf0]  ;;  %v3079_v5 = vor.u32 %v3547_v57, %v3078_v56  ;;  %v3070_v13 = vld [vmem:[#allocation5 + $0x660] sm:$0xf] }
  0x57   :  { %1758 = vmatpush.bf16.msra.mxu0 %v2823_v20  ;;  %1727 = vmatmul.bf16.vlgmr.msrb.gmra.mxu1 %v3819_v40  ;;  %v2846_v20 = vld [vmem:[#allocation5 + $0x4a0] sm:$0xf]  ;;  %v2783_v28 = vor.u32 %v3473_v19, %v2782_v18  ;;  %v3579_v62 = vld [vmem:[#allocation5 + $0x774] sm:$0xf0]  ;;  %v3825_v18 = vpack.c.bf16 %v88_v3, %v88_v3  ;;  %v3561_v19 = vld [vmem:[#allocation5 + $0x6e4] sm:$0xf0] }
  0x58   :  { %1771 = vmatpush.bf16.msra.mxu1 %v2887_v24  ;;  %1740 = vmatmul.bf16.vlgmr.msrb.gmra.mxu2 %v3813_v34  ;;  %v3505_v24 = vld [vmem:[#allocation5 + $0x524] sm:$0xf0]  ;;  %v2847_v29 = vor.u32 %v3489_v22, %v2846_v20  ;;  %v91_v10 = vld [vmem:[#allocation2 + $0x58] sm:$0xff]  ;;  %v3207_v12 = vor.u32 %v3579_v62, %v3206_v61  ;;  %v3198_v20 = vld [vmem:[#allocation5 + $0x760] sm:$0xf] }
  0x59   :  { %1784 = vmatpush.bf16.msra.mxu2 %v2951_v26  ;;  %1753 = vmatmul.bf16.vlgmr.msrb.gmra.mxu3 %v3817_v38  ;;  %v2974_v26 = vld [vmem:[#allocation5 + $0x5a0] sm:$0xf]  ;;  %v3543_v32 = vld [vmem:[#allocation5 + $0x654] sm:$0xf0]  ;;  %v3110_v61 = vld [vmem:[#allocation5 + $0x6b0] sm:$0xf] }
  0x5a   :  { %1797 = vmatpush.bf16.msra.mxu3 %v3015_v30  ;;  %v2911_v30 = vor.u32 %v3505_v24, %v2910_v23  ;;  %v2975_v35 = vor.u32 %v3521_v27, %v2974_v26  ;;  %v3829_v23 = vpack.c.bf16 %v89_v7, %v89_v7  ;;  %v3262_v24 = vld [vmem:[#allocation5 + $0x7e0] sm:$0xf]  ;;  %v3593_v26 = vld [vmem:[#allocation5 + $0x7e4] sm:$0xf0]  ;;  %v3831_v27 = vpack.c.bf16 %v91_v10, %v91_v10  ;;  %v3559_v36 = vld [vmem:[#allocation5 + $0x6d4] sm:$0xf0] }
  0x5b   :  { %1759 = vmatpush.bf16.msra.mxu0 %v2815_v39  ;;  %v2902_v39 = vld [vmem:[#allocation5 + $0x510] sm:$0xf]  ;;  %v3054_v47 = vld [vmem:[#allocation5 + $0x640] sm:$0xf]  ;;  %v3587_v3 = vld [vmem:[#allocation5 + $0x7b4] sm:$0xf0] }
  0x5c   :  { %1772 = vmatpush.bf16.msra.mxu1 %v2879_v41  ;;  %v3503_v41 = vld [vmem:[#allocation5 + $0x514] sm:$0xf0]  ;;  %v3038_v7 = vld [vmem:[#allocation5 + $0x620] sm:$0xf]  ;;  %v3537_v10 = vld [vmem:[#allocation5 + $0x624] sm:$0xf0] }
  0x5d   :  { %1785 = vmatpush.bf16.msra.mxu2 %v2943_v42  ;;  %v2966_v42 = vld [vmem:[#allocation5 + $0x590] sm:$0xf]  ;;  %v2903_v49 = vor.u32 %v3503_v41, %v2902_v39  ;;  %v3575_v41 = vld [vmem:[#allocation5 + $0x754] sm:$0xf0] }
  0x5e   :  { %1798 = vmatpush.bf16.msra.mxu3 %v3007_v46  ;;  %v3469_v46 = vld [vmem:[#allocation5 + $0x404] sm:$0xf0]  ;;  %v3190_v39 = vld [vmem:[#allocation5 + $0x750] sm:$0xf] }
  0x5f   :  { %1760 = vmatpush.bf16.msra.mxu0 %v2807_v52  ;;  %v3501_v52 = vld [vmem:[#allocation5 + $0x504] sm:$0xf0]  ;;  %v2767_v59 = vor.u32 %v3469_v46, %v2766_v45  ;;  %v3127_v45 = vor.u32 %v3559_v36, %v3126_v33  ;;  %v3191_v46 = vor.u32 %v3575_v41, %v3190_v39  ;;  %v3567_v33 = vld [vmem:[#allocation5 + $0x714] sm:$0xf0]  ;;  %v3022_v41 = vld [vmem:[#allocation5 + $0x600] sm:$0xf] }
  0x60   :  { %1773 = vmatpush.bf16.msra.mxu1 %v2871_v53  ;;  %v2967_v53 = vor.u32 %v3519_v43, %v2966_v42  ;;  %v3254_v42 = vld [vmem:[#allocation5 + $0x7d0] sm:$0xf]  ;;  %v3591_v43 = vld [vmem:[#allocation5 + $0x7d4] sm:$0xf0] }
  0x61   :  { %1786 = vmatpush.bf16.msra.mxu2 %v2935_v54  ;;  %v2958_v54 = vld [vmem:[#allocation5 + $0x580] sm:$0xf]  ;;  %v3255_v50 = vor.u32 %v3591_v43, %v3254_v42  ;;  %v3583_v36 = vld [vmem:[#allocation5 + $0x794] sm:$0xf0]  ;;  %v3533_v42 = vld [vmem:[#allocation5 + $0x604] sm:$0xf0] }
  0x62   :  { %1799 = vmatpush.bf16.msra.mxu3 %v2999_v58  ;;  %v3142_v58 = vld [vmem:[#allocation5 + $0x6f0] sm:$0xf]  ;;  %v2959_v4 = vor.u32 %v3517_v55, %v2958_v54  ;;  %v3246_v54 = vld [vmem:[#allocation5 + $0x7c0] sm:$0xf]  ;;  %v3589_v55 = vld [vmem:[#allocation5 + $0x7c4] sm:$0xf0] }
  0x63   :  { %1761 = vmatpush.bf16.msra.mxu0 %v2799_v0  ;;  %v2895_v0 = vor.u32 %v3501_v52, %v2894_v51  ;;  %v3143_v11 = vor.u32 %v3563_v60, %v3142_v58  ;;  %v3557_v51 = vld [vmem:[#allocation5 + $0x6c4] sm:$0xf0]  ;;  %v3182_v52 = vld [vmem:[#allocation5 + $0x740] sm:$0xf]  ;;  %v3539_v60 = vld [vmem:[#allocation5 + $0x634] sm:$0xf0]  ;;  %v3247_v62 = vor.u32 %v3589_v55, %v3246_v54  ;;  %v3023_v55 = vor.u32 %v3533_v42, %v3022_v41 }
  0x64   :  { %1774 = vmatpush.bf16.msra.mxu1 %v2863_v1  ;;  %v3270_v1 = vld [vmem:[#allocation5 + $0x7f0] sm:$0xf]  ;;  %v3370_v54 = vld [vmem:[#allocation5 + $0xf4] sm:$0xf]  ;;  %v2424_v41 = vld [vmem:[#allocation5 + $0x158] sm:$0xf0] }
  0x65   :  { %1787 = vmatpush.bf16.msra.mxu2 %v2927_v2  ;;  %v3595_v2 = vld [vmem:[#allocation5 + $0x7f4] sm:$0xf0]  ;;  %v3398_v42 = vld [vmem:[#allocation5 + $0x1d4] sm:$0xf] }
  0x66   :  { %1800 = vmatpush.bf16.msra.mxu3 %v2991_v6  ;;  %v90_v6 = vld [vmem:[#allocation2 + $0x50] sm:$0xff] }
  0x67   :  { %1762 = vmatpush.bf16.msra.mxu0 %v2791_v14  ;;  %v3545_v14 = vld [vmem:[#allocation5 + $0x664] sm:$0xf0]  ;;  %v3827_v22 = vpack.c.bf16 %v90_v6, %v90_v6 }
  0x68   :  { %1775 = vmatpush.bf16.msra.mxu1 %v2855_v16  ;;  %v3134_v16 = vld [vmem:[#allocation5 + $0x6e0] sm:$0xf] }
  0x69   :  { %1788 = vmatpush.bf16.msra.mxu2 %v2919_v17  ;;  %v3271_v17 = vor.u32 %v3595_v2, %v3270_v1  ;;  %v3571_v1 = vld [vmem:[#allocation5 + $0x734] sm:$0xf0]  ;;  %v3238_v2 = vld [vmem:[#allocation5 + $0x7b0] sm:$0xf] }
  0x6a   :  { %1801 = vmatpush.bf16.msra.mxu3 %v2983_v21  ;;  %v3577_v21 = vld [vmem:[#allocation5 + $0x764] sm:$0xf0] }
  0x6b   :  { %1763 = vmatpush.bf16.msra.mxu0 %v2783_v28  ;;  %v3071_v28 = vor.u32 %v3545_v14, %v3070_v13  ;;  %v3553_v13 = vld [vmem:[#allocation5 + $0x6a4] sm:$0xf0]  ;;  %v3166_v14 = vld [vmem:[#allocation5 + $0x720] sm:$0xf] }
  0x6c   :  { %1776 = vmatpush.bf16.msra.mxu1 %v2847_v29  ;;  %v3135_v29 = vor.u32 %v3561_v19, %v3134_v16  ;;  %v3569_v16 = vld [vmem:[#allocation5 + $0x724] sm:$0xf0] }
  0x6d   :  { %1789 = vmatpush.bf16.msra.mxu2 %v2911_v30  ;;  %v3199_v30 = vor.u32 %v3577_v21, %v3198_v20  ;;  %v3585_v19 = vld [vmem:[#allocation5 + $0x7a4] sm:$0xf0]  ;;  %v3039_v20 = vor.u32 %v3537_v10, %v3038_v7  ;;  %v3352_v7 = vld [vmem:[#allocation5 + $0x64] sm:$0xf]  ;;  %v2304_v10 = vld [vmem:[#allocation5 + $0x68] sm:$0xf0] }
  0x6e   :  { %1802 = vmatpush.bf16.msra.mxu3 %v2975_v35  ;;  %v3263_v35 = vor.u32 %v3593_v26, %v3262_v24  ;;  %v3167_v24 = vor.u32 %v3569_v16, %v3166_v14  ;;  %v3030_v26 = vld [vmem:[#allocation5 + $0x610] sm:$0xf]  ;;  %v2368_v14 = vld [vmem:[#allocation5 + $0xe8] sm:$0xf0]  ;;  %v3384_v16 = vld [vmem:[#allocation5 + $0x164] sm:$0xf] }
  0x6f   :  { %1764 = vmatpush.bf16.msra.mxu0 %v2775_v44  ;;  %v3063_v44 = vor.u32 %v3543_v32, %v3062_v31  ;;  %v3551_v31 = vld [vmem:[#allocation5 + $0x694] sm:$0xf0]  ;;  %v3158_v32 = vld [vmem:[#allocation5 + $0x710] sm:$0xf] }
  0x70   :  { %1777 = vmatpush.bf16.msra.mxu1 %v2839_v48  ;;  %v3541_v48 = vld [vmem:[#allocation5 + $0x644] sm:$0xf0] }
  0x71   :  { %1790 = vmatpush.bf16.msra.mxu2 %v2903_v49  ;;  %v3118_v49 = vld [vmem:[#allocation5 + $0x6c0] sm:$0xf]  ;;  %v3055_v56 = vor.u32 %v3541_v48, %v3054_v47 }
  0x72   :  { %1803 = vmatpush.bf16.msra.mxu3 %v2967_v53  ;;  %v3573_v53 = vld [vmem:[#allocation5 + $0x744] sm:$0xf0]  ;;  %v3119_v57 = vor.u32 %v3557_v51, %v3118_v49  ;;  %v3150_v47 = vld [vmem:[#allocation5 + $0x700] sm:$0xf] }
  0x73   :  { %1765 = vmatpush.bf16.msra.mxu0 %v2767_v59  ;;  %v3183_v58 = vor.u32 %v3573_v53, %v3182_v52  ;;  %v3046_v59 = vld [vmem:[#allocation5 + $0x630] sm:$0xf]  ;;  %v3565_v49 = vld [vmem:[#allocation5 + $0x704] sm:$0xf0]  ;;  %v3354_v52 = vld [vmem:[#allocation5 + $0x74] sm:$0xf] }
  0x74   :  { %1778 = vmatpush.bf16.msra.mxu1 %v2831_v63  ;;  %v3555_v63 = vld [vmem:[#allocation5 + $0x6b4] sm:$0xf0]  ;;  %v3581_v51 = vld [vmem:[#allocation5 + $0x784] sm:$0xf0]  ;;  %v2312_v53 = vld [vmem:[#allocation5 + $0x78] sm:$0xf0] }
  0x75   :  { %1791 = vmatpush.bf16.msra.mxu2 %v2895_v0  ;;  %v3174_v0 = vld [vmem:[#allocation5 + $0x730] sm:$0xf] }
  0x76   :  { %1804 = vmatpush.bf16.msra.mxu3 %v2959_v4  ;;  %1766 = vmatmul.bf16.vlgmr.msra.gmra.mxu0 %v3825_v18  ;;  %v3047_v4 = vor.u32 %v3539_v60, %v3046_v59  ;;  %v3175_v6 = vor.u32 %v3571_v1, %v3174_v0  ;;  %v3151_v60 = vor.u32 %v3565_v49, %v3150_v47  ;;  %v3348_v47 = vld [vmem:[#allocation5 + $0x44] sm:$0xf] }
  0x77   :  { %1810 = vmatpush.bf16.msrb.mxu0 %v3079_v5  ;;  %1779 = vmatmul.bf16.vlgmr.msra.gmra.mxu1 %v3829_v23  ;;  %v3111_v5 = vor.u32 %v3555_v63, %v3110_v61  ;;  %v3402_v61 = vld [vmem:[#allocation5 + $0x1f4] sm:$0xf]  ;;  %v92_v63 = vld [vmem:[#allocation2 + $0x60] sm:$0xff]  ;;  %v2315_v1 = vor.u32 %v3354_v52, %v2312_v53  ;;  %v2416_v53 = vld [vmem:[#allocation5 + $0x148] sm:$0xf0] }
  0x78   :  { %1823 = vmatpush.bf16.msrb.mxu1 %v3143_v11  ;;  %1792 = vmatmul.bf16.vlgmr.msra.gmra.mxu2 %v3827_v22  ;;  %v3102_v11 = vld [vmem:[#allocation5 + $0x6a0] sm:$0xf]  ;;  %v3364_v49 = vld [vmem:[#allocation5 + $0xc4] sm:$0xf] }
  0x79   :  { %1836 = vmatpush.bf16.msrb.mxu2 %v3207_v12  ;;  %1805 = vmatmul.bf16.vlgmr.msra.gmra.mxu3 %v3831_v27  ;;  %v3239_v12 = vor.u32 %v3587_v3, %v3238_v2  ;;  %v3103_v21 = vor.u32 %v3553_v13, %v3102_v11  ;;  %v94_v2 = vld [vmem:[#allocation2 + $0x70] sm:$0xff]  ;;  %v93_v3 = vld [vmem:[#allocation2 + $0x68] sm:$0xff]  ;;  %v3368_v11 = vld [vmem:[#allocation5 + $0xe4] sm:$0xf]  ;;  %v3837_v13 = vpack.c.bf16 %v92_v63, %v92_v63 }
  0x7a   :  { %1849 = vmatpush.bf16.msrb.mxu3 %v3271_v17  ;;  %v3230_v17 = vld [vmem:[#allocation5 + $0x7a0] sm:$0xf]  ;;  %v3380_v52 = vld [vmem:[#allocation5 + $0x144] sm:$0xf]  ;;  %v2344_v63 = vld [vmem:[#allocation5 + $0xb8] sm:$0xf0] }
  0x7b   :  { %1811 = vmatpush.bf16.msrb.mxu0 %v3071_v28  ;;  %v3535_v28 = vld [vmem:[#allocation5 + $0x614] sm:$0xf0] }
  0x7c   :  { %1824 = vmatpush.bf16.msrb.mxu1 %v3135_v29  ;;  %v3094_v29 = vld [vmem:[#allocation5 + $0x690] sm:$0xf]  ;;  %v3031_v39 = vor.u32 %v3535_v28, %v3030_v26  ;;  %v2307_v28 = vor.u32 %v3352_v7, %v2304_v10  ;;  %v3344_v7 = vld [vmem:[#allocation5 + $0x24] sm:$0xf]  ;;  %v2272_v10 = vld [vmem:[#allocation5 + $0x28] sm:$0xf0] }
  0x7d   :  { %1837 = vmatpush.bf16.msrb.mxu2 %v3199_v30  ;;  %v3231_v30 = vor.u32 %v3585_v19, %v3230_v17  ;;  %v3095_v43 = vor.u32 %v3551_v31, %v3094_v29  ;;  %v2432_v17 = vld [vmem:[#allocation5 + $0x168] sm:$0xf0]  ;;  %v3839_v19 = vpack.c.bf16 %v94_v2, %v94_v2  ;;  %v2371_v29 = vor.u32 %v3368_v11, %v2368_v14  ;;  %v3350_v31 = vld [vmem:[#allocation5 + $0x54] sm:$0xf]  ;;  %v3360_v11 = vld [vmem:[#allocation5 + $0xa4] sm:$0xf] }
  0x7e   :  { %1850 = vmatpush.bf16.msrb.mxu3 %v3263_v35  ;;  %v3222_v35 = vld [vmem:[#allocation5 + $0x790] sm:$0xf]  ;;  %v3394_v2 = vld [vmem:[#allocation5 + $0x1b4] sm:$0xf]  ;;  %v2336_v14 = vld [vmem:[#allocation5 + $0xa8] sm:$0xf0] }
  0x7f   :  { %1812 = vmatpush.bf16.msrb.mxu0 %v3063_v44  ;;  %v3159_v44 = vor.u32 %v3567_v33, %v3158_v32  ;;  %v3223_v48 = vor.u32 %v3583_v36, %v3222_v35  ;;  %v2296_v32 = vld [vmem:[#allocation5 + $0x58] sm:$0xf0]  ;;  %v3366_v33 = vld [vmem:[#allocation5 + $0xd4] sm:$0xf] }
  0x80   :  { %1825 = vmatpush.bf16.msrb.mxu1 %v3127_v45  ;;  %v3086_v45 = vld [vmem:[#allocation5 + $0x680] sm:$0xf]  ;;  %v2360_v36 = vld [vmem:[#allocation5 + $0xd8] sm:$0xf0] }
  0x81   :  { %1838 = vmatpush.bf16.msrb.mxu2 %v3191_v46  ;;  %v3549_v46 = vld [vmem:[#allocation5 + $0x684] sm:$0xf0] }
  0x82   :  { %1851 = vmatpush.bf16.msrb.mxu3 %v3255_v50  ;;  %v3214_v50 = vld [vmem:[#allocation5 + $0x780] sm:$0xf]  ;;  %v3087_v59 = vor.u32 %v3549_v46, %v3086_v45  ;;  %v2363_v45 = vor.u32 %v3366_v33, %v2360_v36  ;;  %v3358_v33 = vld [vmem:[#allocation5 + $0x94] sm:$0xf]  ;;  %v2328_v36 = vld [vmem:[#allocation5 + $0x98] sm:$0xf0] }
  0x83   :  { %1813 = vmatpush.bf16.msrb.mxu0 %v3055_v56  ;;  %v2376_v56 = vld [vmem:[#allocation5 + $0xf8] sm:$0xf0]  ;;  %v3215_v0 = vor.u32 %v3581_v51, %v3214_v50  ;;  %v2352_v51 = vld [vmem:[#allocation5 + $0xc8] sm:$0xf0] }
  0x84   :  { %1826 = vmatpush.bf16.msrb.mxu1 %v3119_v57  ;;  %v3386_v57 = vld [vmem:[#allocation5 + $0x174] sm:$0xf] }
  0x85   :  { %1839 = vmatpush.bf16.msrb.mxu2 %v3183_v58  ;;  %v2440_v58 = vld [vmem:[#allocation5 + $0x178] sm:$0xf0] }
  0x86   :  { %1852 = vmatpush.bf16.msrb.mxu3 %v3247_v62  ;;  %v2504_v62 = vld [vmem:[#allocation5 + $0x1f8] sm:$0xf0] }
  0x87   :  { %1814 = vmatpush.bf16.msrb.mxu0 %v3047_v4  ;;  %v95_v4 = vld [vmem:[#allocation2 + $0x78] sm:$0xff] }
  0x88   :  { %1827 = vmatpush.bf16.msrb.mxu1 %v3111_v5  ;;  %v2379_v5 = vor.u32 %v3370_v54, %v2376_v56  ;;  %v3843_v26 = vpack.c.bf16 %v95_v4, %v95_v4  ;;  %v3396_v54 = vld [vmem:[#allocation5 + $0x1c4] sm:$0xf] }
  0x89   :  { %1840 = vmatpush.bf16.msrb.mxu2 %v3175_v6  ;;  %v2443_v6 = vor.u32 %v3386_v57, %v2440_v58  ;;  %v2355_v57 = vor.u32 %v3364_v49, %v2352_v51  ;;  %v2419_v58 = vor.u32 %v3380_v52, %v2416_v53  ;;  %v3356_v49 = vld [vmem:[#allocation5 + $0x84] sm:$0xf]  ;;  %v2384_v53 = vld [vmem:[#allocation5 + $0x108] sm:$0xf0] }
  0x8a   :  { %1853 = vmatpush.bf16.msrb.mxu3 %v3239_v12  ;;  %v2507_v12 = vor.u32 %v3402_v61, %v2504_v62  ;;  %v3362_v61 = vld [vmem:[#allocation5 + $0xb4] sm:$0xf]  ;;  %v3372_v51 = vld [vmem:[#allocation5 + $0x104] sm:$0xf] }
  0x8b   :  { %1815 = vmatpush.bf16.msrb.mxu0 %v3039_v20  ;;  %v3841_v20 = vpack.c.bf16 %v93_v3, %v93_v3  ;;  %v2472_v3 = vld [vmem:[#allocation5 + $0x1b8] sm:$0xf0] }
  0x8c   :  { %1828 = vmatpush.bf16.msrb.mxu1 %v3103_v21  ;;  %v3400_v21 = vld [vmem:[#allocation5 + $0x1e4] sm:$0xf] }
  0x8d   :  { %1841 = vmatpush.bf16.msrb.mxu2 %v3167_v24  ;;  %v2496_v24 = vld [vmem:[#allocation5 + $0x1e8] sm:$0xf0] }
  0x8e   :  { %1854 = vmatpush.bf16.msrb.mxu3 %v3231_v30  ;;  %v2435_v30 = vor.u32 %v3384_v16, %v2432_v17  ;;  %v2499_v35 = vor.u32 %v3400_v21, %v2496_v24  ;;  %v3376_v16 = vld [vmem:[#allocation5 + $0x124] sm:$0xf]  ;;  %v2400_v17 = vld [vmem:[#allocation5 + $0x128] sm:$0xf0] }
  0x8f   :  { %1816 = vmatpush.bf16.msrb.mxu0 %v3031_v39  ;;  %v3382_v39 = vld [vmem:[#allocation5 + $0x154] sm:$0xf]  ;;  %v3392_v21 = vld [vmem:[#allocation5 + $0x1a4] sm:$0xf]  ;;  %v2464_v24 = vld [vmem:[#allocation5 + $0x1a8] sm:$0xf0] }
  0x90   :  { %1829 = vmatpush.bf16.msrb.mxu1 %v3095_v43  ;;  %v2488_v43 = vld [vmem:[#allocation5 + $0x1d8] sm:$0xf0]  ;;  %v2427_v46 = vor.u32 %v3382_v39, %v2424_v41  ;;  %v3374_v39 = vld [vmem:[#allocation5 + $0x114] sm:$0xf] }
  0x91   :  { %1842 = vmatpush.bf16.msrb.mxu2 %v3159_v44  ;;  %v2299_v44 = vor.u32 %v3350_v31, %v2296_v32  ;;  %v2491_v50 = vor.u32 %v3398_v42, %v2488_v43  ;;  %v3342_v31 = vld [vmem:[#allocation5 + $0x14] sm:$0xf]  ;;  %v2264_v32 = vld [vmem:[#allocation5 + $0x18] sm:$0xf0] }
  0x92   :  { %1855 = vmatpush.bf16.msrb.mxu3 %v3223_v48  ;;  %v2288_v48 = vld [vmem:[#allocation5 + $0x48] sm:$0xf0]  ;;  %v2392_v41 = vld [vmem:[#allocation5 + $0x118] sm:$0xf0]  ;;  %v3390_v42 = vld [vmem:[#allocation5 + $0x194] sm:$0xf] }
  0x93   :  { %1817 = vmatpush.bf16.msrb.mxu0 %v3023_v55  ;;  %v2480_v55 = vld [vmem:[#allocation5 + $0x1c8] sm:$0xf0]  ;;  %v2291_v56 = vor.u32 %v3348_v47, %v2288_v48  ;;  %v2456_v43 = vld [vmem:[#allocation5 + $0x198] sm:$0xf0]  ;;  %v2331_v47 = vor.u32 %v3358_v33, %v2328_v36  ;;  %v2395_v48 = vor.u32 %v3374_v39, %v2392_v41  ;;  %v3430_v33 = vld [vmem:[#allocation5 + $0x2d4] sm:$0xf] }
  0x94   :  { %1830 = vmatpush.bf16.msrb.mxu1 %v3087_v59  ;;  %v3346_v59 = vld [vmem:[#allocation5 + $0x34] sm:$0xf]  ;;  %v2483_v62 = vor.u32 %v3396_v54, %v2480_v55  ;;  %v2459_v52 = vor.u32 %v3390_v42, %v2456_v43  ;;  %v3388_v54 = vld [vmem:[#allocation5 + $0x184] sm:$0xf]  ;;  %v2448_v55 = vld [vmem:[#allocation5 + $0x188] sm:$0xf0] }
  0x95   :  { %1843 = vmatpush.bf16.msrb.mxu2 %v3151_v60  ;;  %v2280_v60 = vld [vmem:[#allocation5 + $0x38] sm:$0xf0]  ;;  %v3446_v39 = vld [vmem:[#allocation5 + $0x354] sm:$0xf] }
  0x96   :  { %1856 = vmatpush.bf16.msrb.mxu3 %v3215_v0  ;;  %1818 = vmatmul.bf16.vlgmr.msrb.gmra.mxu0 %v3837_v13  ;;  %v3378_v0 = vld [vmem:[#allocation5 + $0x134] sm:$0xf]  ;;  %v2283_v4 = vor.u32 %v3346_v59, %v2280_v60  ;;  %v2632_v60 = vld [vmem:[#allocation5 + $0x2f8] sm:$0xf0] }
  0x97   :  { %1862 = vmatpush.bf16.msra.mxu0 %v2315_v1  ;;  %1831 = vmatmul.bf16.vlgmr.msrb.gmra.mxu1 %v3841_v20  ;;  %v2408_v1 = vld [vmem:[#allocation5 + $0x138] sm:$0xf0]  ;;  %v3462_v42 = vld [vmem:[#allocation5 + $0x3d4] sm:$0xf] }
  0x98   :  { %1875 = vmatpush.bf16.msra.mxu1 %v2379_v5  ;;  %1844 = vmatmul.bf16.vlgmr.msrb.gmra.mxu2 %v3839_v19  ;;  %v2347_v5 = vor.u32 %v3362_v61, %v2344_v63  ;;  %v3450_v61 = vld [vmem:[#allocation5 + $0x374] sm:$0xf]  ;;  %v2616_v36 = vld [vmem:[#allocation5 + $0x2d8] sm:$0xf0] }
  0x99   :  { %1888 = vmatpush.bf16.msra.mxu2 %v2443_v6  ;;  %1857 = vmatmul.bf16.vlgmr.msrb.gmra.mxu3 %v3843_v26  ;;  %v2411_v6 = vor.u32 %v3378_v0, %v2408_v1  ;;  %v2387_v0 = vor.u32 %v3372_v51, %v2384_v53  ;;  %v3466_v1 = vld [vmem:[#allocation5 + $0x3f4] sm:$0xf]  ;;  %v2680_v41 = vld [vmem:[#allocation5 + $0x358] sm:$0xf0]  ;;  %v3444_v51 = vld [vmem:[#allocation5 + $0x344] sm:$0xf] }
  0x9a   :  { %1901 = vmatpush.bf16.msra.mxu3 %v2507_v12  ;;  %v2475_v12 = vor.u32 %v3394_v2, %v2472_v3  ;;  %v2760_v2 = vld [vmem:[#allocation5 + $0x3f8] sm:$0xf0]  ;;  %v2451_v3 = vor.u32 %v3388_v54, %v2448_v55  ;;  %v3853_v53 = vld [vmem:[#allocation7] sm:$0x3]  ;;  %v3410_v55 = vld [vmem:[#allocation5 + $0x234] sm:$0xf] }
  0x9b   :  { %1863 = vmatpush.bf16.msra.mxu0 %v2307_v28  ;;  %v2275_v28 = vor.u32 %v3344_v7, %v2272_v10  ;;  %v3416_v7 = vld [vmem:[#allocation5 + $0x264] sm:$0xf]  ;;  %v2560_v10 = vld [vmem:[#allocation5 + $0x268] sm:$0xf0]  ;;  %v2744_v43 = vld [vmem:[#allocation5 + $0x3d8] sm:$0xf0] }
  0x9c   :  { %1876 = vmatpush.bf16.msra.mxu1 %v2371_v29  ;;  %v2339_v29 = vor.u32 %v3360_v11, %v2336_v14  ;;  %v3432_v11 = vld [vmem:[#allocation5 + $0x2e4] sm:$0xf]  ;;  %v2624_v14 = vld [vmem:[#allocation5 + $0x2e8] sm:$0xf0] }
  0x9d   :  { %1889 = vmatpush.bf16.msra.mxu2 %v2435_v30  ;;  %v2403_v30 = vor.u32 %v3376_v16, %v2400_v17  ;;  %v3448_v16 = vld [vmem:[#allocation5 + $0x364] sm:$0xf]  ;;  %v2688_v17 = vld [vmem:[#allocation5 + $0x368] sm:$0xf0] }
  0x9e   :  { %1902 = vmatpush.bf16.msra.mxu3 %v2499_v35  ;;  %v2467_v35 = vor.u32 %v3392_v21, %v2464_v24  ;;  %v3464_v21 = vld [vmem:[#allocation5 + $0x3e4] sm:$0xf]  ;;  %v2752_v24 = vld [vmem:[#allocation5 + $0x3e8] sm:$0xf0] }
  0x9f   :  { %1864 = vmatpush.bf16.msra.mxu0 %v2299_v44  ;;  %v2267_v44 = vor.u32 %v3342_v31, %v2264_v32  ;;  %v3414_v31 = vld [vmem:[#allocation5 + $0x254] sm:$0xf]  ;;  %v2552_v32 = vld [vmem:[#allocation5 + $0x258] sm:$0xf0] }
  0xa0   :  { %1877 = vmatpush.bf16.msra.mxu1 %v2363_v45  ;;  %v3340_v45 = vld [vmem:[#allocation5 + $0x4] sm:$0xf] }
  0xa1   :  { %1890 = vmatpush.bf16.msra.mxu2 %v2427_v46  ;;  %v2256_v46 = vld [vmem:[#allocation5 + $0x8] sm:$0xf0] }
  0xa2   :  { %1903 = vmatpush.bf16.msra.mxu3 %v2491_v50  ;;  %v2320_v50 = vld [vmem:[#allocation5 + $0x88] sm:$0xf0]  ;;  %v2259_v59 = vor.u32 %v3340_v45, %v2256_v46  ;;  %v3412_v45 = vld [vmem:[#allocation5 + $0x244] sm:$0xf]  ;;  %v2619_v46 = vor.u32 %v3430_v33, %v2616_v36  ;;  %v2520_v33 = vld [vmem:[#allocation5 + $0x218] sm:$0xf0] }
  0xa3   :  { %1865 = vmatpush.bf16.msra.mxu0 %v2291_v56  ;;  %v3418_v56 = vld [vmem:[#allocation5 + $0x274] sm:$0xf]  ;;  %v2323_v63 = vor.u32 %v3356_v49, %v2320_v50  ;;  %v3428_v49 = vld [vmem:[#allocation5 + $0x2c4] sm:$0xf]  ;;  %v2608_v50 = vld [vmem:[#allocation5 + $0x2c8] sm:$0xf0] }
  0xa4   :  { %1878 = vmatpush.bf16.msra.mxu1 %v2355_v57  ;;  %v2568_v57 = vld [vmem:[#allocation5 + $0x278] sm:$0xf0] }
  0xa5   :  { %1891 = vmatpush.bf16.msra.mxu2 %v2419_v58  ;;  %v3434_v58 = vld [vmem:[#allocation5 + $0x2f4] sm:$0xf] }
  0xa6   :  { %1904 = vmatpush.bf16.msra.mxu3 %v2483_v62  ;;  %v2696_v62 = vld [vmem:[#allocation5 + $0x378] sm:$0xf0] }
  0xa7   :  { %1866 = vmatpush.bf16.msra.mxu0 %v2283_v4  ;;  %v2571_v4 = vor.u32 %v3418_v56, %v2568_v57  ;;  %v2536_v57 = vld [vmem:[#allocation5 + $0x238] sm:$0xf0] }
  0xa8   :  { %1879 = vmatpush.bf16.msra.mxu1 %v2347_v5  ;;  %v2635_v5 = vor.u32 %v3434_v58, %v2632_v60  ;;  %v3426_v58 = vld [vmem:[#allocation5 + $0x2b4] sm:$0xf] }
  0xa9   :  { %1892 = vmatpush.bf16.msra.mxu2 %v2411_v6  ;;  %v2699_v6 = vor.u32 %v3450_v61, %v2696_v62  ;;  %v2600_v61 = vld [vmem:[#allocation5 + $0x2b8] sm:$0xf0]  ;;  %v3442_v62 = vld [vmem:[#allocation5 + $0x334] sm:$0xf] }
  0xaa   :  { %1905 = vmatpush.bf16.msra.mxu3 %v2475_v12  ;;  %v2763_v12 = vor.u32 %v3466_v1, %v2760_v2  ;;  %v2728_v1 = vld [vmem:[#allocation5 + $0x3b8] sm:$0xf0]  ;;  %v2539_v2 = vor.u32 %v3410_v55, %v2536_v57  ;;  %v3436_v55 = vld [vmem:[#allocation5 + $0x304] sm:$0xf]  ;;  %v2640_v57 = vld [vmem:[#allocation5 + $0x308] sm:$0xf0] }
  0xab   :  { %1867 = vmatpush.bf16.msra.mxu0 %v2275_v28  ;;  %v2563_v28 = vor.u32 %v3416_v7, %v2560_v10  ;;  %v2528_v7 = vld [vmem:[#allocation5 + $0x228] sm:$0xf0]  ;;  %v3424_v10 = vld [vmem:[#allocation5 + $0x2a4] sm:$0xf] }
  0xac   :  { %1880 = vmatpush.bf16.msra.mxu1 %v2339_v29  ;;  %v2627_v29 = vor.u32 %v3432_v11, %v2624_v14  ;;  %v2592_v14 = vld [vmem:[#allocation5 + $0x2a8] sm:$0xf0] }
  0xad   :  { %1893 = vmatpush.bf16.msra.mxu2 %v2403_v30  ;;  %v2691_v30 = vor.u32 %v3448_v16, %v2688_v17  ;;  %v3440_v16 = vld [vmem:[#allocation5 + $0x324] sm:$0xf]  ;;  %v2656_v17 = vld [vmem:[#allocation5 + $0x328] sm:$0xf0] }
  0xae   :  { %1906 = vmatpush.bf16.msra.mxu3 %v2467_v35  ;;  %v2755_v35 = vor.u32 %v3464_v21, %v2752_v24  ;;  %v3456_v21 = vld [vmem:[#allocation5 + $0x3a4] sm:$0xf]  ;;  %v2720_v24 = vld [vmem:[#allocation5 + $0x3a8] sm:$0xf0] }
  0xaf   :  { %1868 = vmatpush.bf16.msra.mxu0 %v2267_v44  ;;  %v2555_v44 = vor.u32 %v3414_v31, %v2552_v32  ;;  %v2659_v31 = vor.u32 %v3440_v16, %v2656_v17  ;;  %v3406_v32 = vld [vmem:[#allocation5 + $0x214] sm:$0xf]  ;;  %v3480_v17 = vld [vmem:[#allocation5 + $0x464] sm:$0xf] }
  0xb0   :  { %1881 = vmatpush.bf16.msra.mxu1 %v2331_v47  ;;  %v2683_v47 = vor.u32 %v3446_v39, %v2680_v41  ;;  %v2723_v39 = vor.u32 %v3456_v21, %v2720_v24  ;;  %v2584_v41 = vld [vmem:[#allocation5 + $0x298] sm:$0xf0]  ;;  %v2816_v21 = vld [vmem:[#allocation5 + $0x468] sm:$0xf0]  ;;  %v3496_v24 = vld [vmem:[#allocation5 + $0x4e4] sm:$0xf] }
  0xb1   :  { %1894 = vmatpush.bf16.msra.mxu2 %v2395_v48  ;;  %v2544_v48 = vld [vmem:[#allocation5 + $0x248] sm:$0xf0] }
  0xb2   :  { %1907 = vmatpush.bf16.msra.mxu3 %v2459_v52  ;;  %v2672_v52 = vld [vmem:[#allocation5 + $0x348] sm:$0xf0]  ;;  %v2547_v54 = vor.u32 %v3412_v45, %v2544_v48  ;;  %v3454_v45 = vld [vmem:[#allocation5 + $0x394] sm:$0xf] }
  0xb3   :  { %1869 = vmatpush.bf16.msra.mxu0 %v2259_v59  ;;  %v2675_v56 = vor.u32 %v3444_v51, %v2672_v52  ;;  %v370_v59 = vperm.slane %v3853_v53, 0 }
  0xb4   :  { %1882 = vmatpush.bf16.msra.mxu1 %v2323_v63  ;;  %v2664_v63 = vld [vmem:[#allocation5 + $0x338] sm:$0xf0] }
  0xb5   :  { %1895 = vmatpush.bf16.msra.mxu2 %v2387_v0  ;;  %v3458_v0 = vld [vmem:[#allocation5 + $0x3b4] sm:$0xf] }
  0xb6   :  { %1908 = vmatpush.bf16.msra.mxu3 %v2451_v3  ;;  %1870 = vmatmul.bf16.vlgmr.msra.gmra.mxu0 %v3803_v9  ;;  %v3460_v9 = vld [vmem:[#allocation5 + $0x3c4] sm:$0xf]  ;;  %v1663_v3 = vpop.f32.mrf.mxu0 }
  0xb7   :  { %1914 = vmatpush.bf16.msrb.mxu0 %v2571_v4  ;;  %1883 = vmatmul.bf16.vlgmr.msra.gmra.mxu1 %v3810_v25  ;;  %v2611_v25 = vor.u32 %v3428_v49, %v2608_v50  ;;  %v2603_v4 = vor.u32 %v3426_v58, %v2600_v61  ;;  %v1664_v11 = vadd.f32 %v1663_v3, %v370_v59  ;;  %v3404_v50 = vld [vmem:[#allocation5 + $0x204] sm:$0xf]  ;;  %v2704_v59 = vld [vmem:[#allocation5 + $0x388] sm:$0xf0]  ;;  %v2824_v61 = vld [vmem:[#allocation5 + $0x478] sm:$0xf0] }
  0xb8   :  { %1927 = vmatpush.bf16.msrb.mxu1 %v2635_v5  ;;  %1896 = vmatmul.bf16.vlgmr.msra.gmra.mxu2 %v3801_v8  ;;  %v2747_v8 = vor.u32 %v3462_v42, %v2744_v43  ;;  %v2667_v5 = vor.u32 %v3442_v62, %v2664_v63  ;;  %v3438_v42 = vld [vmem:[#allocation5 + $0x314] sm:$0xf]  ;;  %v2648_v43 = vld [vmem:[#allocation5 + $0x318] sm:$0xf0]  ;;  %v2523_v49 = vor.u32 %v3406_v32, %v2520_v33  ;;  %v3452_v58 = vld [vmem:[#allocation5 + $0x384] sm:$0xf] }
  0xb9   :  { %1940 = vmatpush.bf16.msrb.mxu2 %v2699_v6  ;;  %1909 = vmatmul.bf16.vlgmr.msra.gmra.mxu3 %v3805_v15  ;;  %v2736_v15 = vld [vmem:[#allocation5 + $0x3c8] sm:$0xf0]  ;;  %v3408_v6 = vld [vmem:[#allocation5 + $0x224] sm:$0xf]  ;;  %v3498_v62 = vld [vmem:[#allocation5 + $0x4f4] sm:$0xf] }
  0xba   :  { %1953 = vmatpush.bf16.msrb.mxu3 %v2763_v12  ;;  %v2739_v60 = vor.u32 %v3460_v9, %v2736_v15  ;;  %v2731_v12 = vor.u32 %v3458_v0, %v2728_v1  ;;  %v2651_v9 = vor.u32 %v3438_v42, %v2648_v43  ;;  %v3420_v15 = vld [vmem:[#allocation5 + $0x284] sm:$0xf]  ;;  %v2888_v0 = vld [vmem:[#allocation5 + $0x4f8] sm:$0xf0]  ;;  %v3514_v1 = vld [vmem:[#allocation5 + $0x574] sm:$0xf] }
  0xbb   :  { %1915 = vmatpush.bf16.msrb.mxu0 %v2563_v28  ;;  %v2531_v28 = vor.u32 %v3408_v6, %v2528_v7  ;;  %v3530_v6 = vld [vmem:[#allocation5 + $0x5f4] sm:$0xf]  ;;  %v3016_v7 = vld [vmem:[#allocation5 + $0x5f8] sm:$0xf0]  ;;  %v2944_v32 = vld [vmem:[#allocation5 + $0x568] sm:$0xf0] }
  0xbc   :  { %1928 = vmatpush.bf16.msrb.mxu1 %v2627_v29  ;;  %v1676_v29 = vpop.f32.mrf.mxu1  ;;  %v1702_v48 = vpop.f32.mrf.mxu3  ;;  %v3528_v33 = vld [vmem:[#allocation5 + $0x5e4] sm:$0xf]  ;;  %v3478_v42 = vld [vmem:[#allocation5 + $0x454] sm:$0xf]  ;;  %v2808_v43 = vld [vmem:[#allocation5 + $0x458] sm:$0xf0] }
  0xbd   :  { %1941 = vmatpush.bf16.msrb.mxu2 %v2691_v30  ;;  %v2595_v30 = vor.u32 %v3424_v10, %v2592_v14  ;;  %v1677_v36 = vadd.f32 %v1676_v29, %v1664_v11  ;;  %v2707_v10 = vor.u32 %v3452_v58, %v2704_v59  ;;  %v2891_v14 = vor.u32 %v3498_v62, %v2888_v0  ;;  %v3524_v58 = vld [vmem:[#allocation5 + $0x5c4] sm:$0xf]  ;;  %v2792_v62 = vld [vmem:[#allocation5 + $0x438] sm:$0xf0] }
  0xbe   :  { %1954 = vmatpush.bf16.msrb.mxu3 %v2755_v35  ;;  %v3422_v35 = vld [vmem:[#allocation5 + $0x294] sm:$0xf]  ;;  %v1665_v51 = vpop.f32.mrf.mxu0  ;;  %v3019_v29 = vor.u32 %v3530_v6, %v3016_v7  ;;  %v2984_v6 = vld [vmem:[#allocation5 + $0x5b8] sm:$0xf0] }
  0xbf   :  { %1916 = vmatpush.bf16.msrb.mxu0 %v2555_v44  ;;  %v1689_v44 = vpop.f32.mrf.mxu2  ;;  %v2587_v52 = vor.u32 %v3422_v35, %v2584_v41  ;;  %v3008_v35 = vld [vmem:[#allocation5 + $0x5e8] sm:$0xf0] }
  0xc0   :  { %1929 = vmatpush.bf16.msrb.mxu1 %v2619_v46  ;;  %v2712_v46 = vld [vmem:[#allocation5 + $0x398] sm:$0xf0] }
  0xc1   :  { %1942 = vmatpush.bf16.msrb.mxu2 %v2683_v47  ;;  %v1690_v47 = vadd.f32 %v1689_v44, %v1677_v36  ;;  %v2819_v36 = vor.u32 %v3480_v17, %v2816_v21  ;;  %v3494_v44 = vld [vmem:[#allocation5 + $0x4d4] sm:$0xf] }
  0xc2   :  { %1955 = vmatpush.bf16.msrb.mxu3 %v2747_v8  ;;  %v2512_v8 = vld [vmem:[#allocation5 + $0x208] sm:$0xf0] }
  0xc3   :  { %1917 = vmatpush.bf16.msrb.mxu0 %v2547_v54  ;;  %v2576_v54 = vld [vmem:[#allocation5 + $0x288] sm:$0xf0]  ;;  %v2515_v63 = vor.u32 %v3404_v50, %v2512_v8  ;;  %v3000_v50 = vld [vmem:[#allocation5 + $0x5d8] sm:$0xf0]  ;;  %v2811_v8 = vor.u32 %v3478_v42, %v2808_v43  ;;  %v3486_v43 = vld [vmem:[#allocation5 + $0x494] sm:$0xf] }
  0xc4   :  { %1930 = vmatpush.bf16.msrb.mxu1 %v2611_v25  ;;  %v3856_v25 = vadd.f32 %v1702_v48, %v1690_v47  ;;  %v1678_v3 = vpop.f32.mrf.mxu1  ;;  %v3510_v47 = vld [vmem:[#allocation5 + $0x554] sm:$0xf]  ;;  %v2936_v48 = vld [vmem:[#allocation5 + $0x558] sm:$0xf0] }
  0xc5   :  { %1943 = vmatpush.bf16.msrb.mxu2 %v2675_v56  ;;  %v2715_v56 = vor.u32 %v3454_v45, %v2712_v46  ;;  %v3011_v45 = vor.u32 %v3528_v33, %v3008_v35  ;;  %v2872_v46 = vld [vmem:[#allocation5 + $0x4d8] sm:$0xf0]  ;;  %v3506_v3 = vld [vmem:[#allocation5 + $0x534] sm:$0xf] }
  0xc6   :  { %1956 = vmatpush.bf16.msrb.mxu3 %v2739_v60  ;;  %v3482_v60 = vld [vmem:[#allocation5 + $0x474] sm:$0xf]  ;;  %v2875_v51 = vor.u32 %v3494_v44, %v2872_v46  ;;  %v2776_v42 = vld [vmem:[#allocation5 + $0x418] sm:$0xf0] }
  0xc7   :  { %1918 = vmatpush.bf16.msrb.mxu0 %v2539_v2  ;;  %v2952_v2 = vld [vmem:[#allocation5 + $0x578] sm:$0xf0]  ;;  %v2827_v11 = vor.u32 %v3482_v60, %v2824_v61  ;;  %v3474_v61 = vld [vmem:[#allocation5 + $0x434] sm:$0xf] }
  0xc8   :  { %1931 = vmatpush.bf16.msrb.mxu1 %v2603_v4  ;;  %v2579_v4 = vor.u32 %v3420_v15, %v2576_v54  ;;  %v2955_v16 = vor.u32 %v3514_v1, %v2952_v2  ;;  %v2800_v15 = vld [vmem:[#allocation5 + $0x448] sm:$0xf0]  ;;  %v2856_v2 = vld [vmem:[#allocation5 + $0x4b8] sm:$0xf0]  ;;  %v2795_v7 = vor.u32 %v3474_v61, %v2792_v62  ;;  %v3562_v62 = vld [vmem:[#allocation5 + $0x6f4] sm:$0xf] }
  0xc9   :  { %1944 = vmatpush.bf16.msrb.mxu2 %v2667_v5  ;;  %v2643_v5 = vor.u32 %v3436_v55, %v2640_v57  ;;  %v2864_v55 = vld [vmem:[#allocation5 + $0x4c8] sm:$0xf0]  ;;  %v2840_v46 = vld [vmem:[#allocation5 + $0x498] sm:$0xf0] }
  0xca   :  { %1957 = vmatpush.bf16.msrb.mxu3 %v2731_v12  ;;  %v1691_v12 = vpop.f32.mrf.mxu2  ;;  %v2928_v57 = vld [vmem:[#allocation5 + $0x548] sm:$0xf0]  ;;  %v3080_v61 = vld [vmem:[#allocation5 + $0x678] sm:$0xf0] }
  0xcb   :  { %1919 = vmatpush.bf16.msrb.mxu0 %v2531_v28  ;;  %v1704_v28 = vpop.f32.mrf.mxu3  ;;  %v3472_v12 = vld [vmem:[#allocation5 + $0x424] sm:$0xf] }
  0xcc   :  { %1932 = vmatpush.bf16.msrb.mxu1 %v2595_v30  ;;  %v2880_v30 = vld [vmem:[#allocation5 + $0x4e8] sm:$0xf0]  ;;  %v3504_v28 = vld [vmem:[#allocation5 + $0x524] sm:$0xf] }
  0xcd   :  { %1945 = vmatpush.bf16.msrb.mxu2 %v2659_v31  ;;  %v3512_v31 = vld [vmem:[#allocation5 + $0x564] sm:$0xf] }
  0xce   :  { %1958 = vmatpush.bf16.msrb.mxu3 %v2723_v39  ;;  %v2883_v39 = vor.u32 %v3496_v24, %v2880_v30  ;;  %v2947_v41 = vor.u32 %v3512_v31, %v2944_v32  ;;  %v2848_v24 = vld [vmem:[#allocation5 + $0x4a8] sm:$0xf0]  ;;  %v3520_v31 = vld [vmem:[#allocation5 + $0x5a4] sm:$0xf] }
  0xcf   :  { %1920 = vmatpush.bf16.msrb.mxu0 %v2523_v49  ;;  %v3526_v49 = vld [vmem:[#allocation5 + $0x5d4] sm:$0xf]  ;;  %v2976_v32 = vld [vmem:[#allocation5 + $0x5a8] sm:$0xf0] }
  0xd0   :  { %1933 = vmatpush.bf16.msrb.mxu1 %v2587_v52  ;;  %v2939_v52 = vor.u32 %v3510_v47, %v2936_v48  ;;  %v3003_v54 = vor.u32 %v3526_v49, %v3000_v50  ;;  %v3502_v47 = vld [vmem:[#allocation5 + $0x514] sm:$0xf]  ;;  %v2904_v48 = vld [vmem:[#allocation5 + $0x518] sm:$0xf0] }
  0xd1   :  { %1946 = vmatpush.bf16.msrb.mxu2 %v2651_v9  ;;  %v3476_v9 = vld [vmem:[#allocation5 + $0x444] sm:$0xf]  ;;  %v3518_v49 = vld [vmem:[#allocation5 + $0x594] sm:$0xf]  ;;  %v2968_v50 = vld [vmem:[#allocation5 + $0x598] sm:$0xf0] }
  0xd2   :  { %1959 = vmatpush.bf16.msrb.mxu3 %v2715_v56  ;;  %v3508_v56 = vld [vmem:[#allocation5 + $0x544] sm:$0xf] }
  0xd3   :  { %1921 = vmatpush.bf16.msrb.mxu0 %v2515_v63  ;;  %v3862_v59 = vpop.f32.mrf.mxu0  ;;  %v2931_v60 = vor.u32 %v3508_v56, %v2928_v57  ;;  %v3490_v63 = vld [vmem:[#allocation5 + $0x4b4] sm:$0xf]  ;;  %v2971_v57 = vor.u32 %v3518_v49, %v2968_v50  ;;  %v3256_v50 = vld [vmem:[#allocation5 + $0x7d8] sm:$0xf0] }
  0xd4   :  { %1934 = vmatpush.bf16.msrb.mxu1 %v2579_v4  ;;  %v3864_v0 = vpop.f32.mrf.mxu1  ;;  %v2920_v4 = vld [vmem:[#allocation5 + $0x538] sm:$0xf0]  ;;  %v3590_v49 = vld [vmem:[#allocation5 + $0x7d4] sm:$0xf] }
  0xd5   :  { %1947 = vmatpush.bf16.msrb.mxu2 %v2643_v5  ;;  %v3522_v5 = vld [vmem:[#allocation5 + $0x5b4] sm:$0xf] }
  0xd6   :  { %1960 = vmatpush.bf16.msrb.mxu3 %v2707_v10  ;;  %1922 = vmatmul.bf16.vlgmr.msrb.gmra.mxu0 %v3815_v37  ;;  %v2992_v37 = vld [vmem:[#allocation5 + $0x5c8] sm:$0xf0]  ;;  %v2859_v10 = vor.u32 %v3490_v63, %v2856_v2  ;;  %v2987_v21 = vor.u32 %v3522_v5, %v2984_v6  ;;  %v3578_v2 = vld [vmem:[#allocation5 + $0x774] sm:$0xf] }
  0xd7   :  { %1966 = vmatpush.bf16.msra.mxu0 %v2827_v11  ;;  %1935 = vmatmul.bf16.vlgmr.msrb.gmra.mxu1 %v3819_v40  ;;  %v2995_v1 = vor.u32 %v3524_v58, %v2992_v37  ;;  %v2923_v11 = vor.u32 %v3506_v3, %v2920_v4  ;;  %v2896_v58 = vld [vmem:[#allocation5 + $0x508] sm:$0xf0]  ;;  %v3516_v37 = vld [vmem:[#allocation5 + $0x584] sm:$0xf]  ;;  %v3208_v3 = vld [vmem:[#allocation5 + $0x778] sm:$0xf0] }
  0xd8   :  { %1979 = vmatpush.bf16.msra.mxu1 %v2891_v14  ;;  %1948 = vmatmul.bf16.vlgmr.msrb.gmra.mxu2 %v3813_v34  ;;  %v3492_v34 = vld [vmem:[#allocation5 + $0x4c4] sm:$0xf]  ;;  %v2784_v14 = vld [vmem:[#allocation5 + $0x428] sm:$0xf0]  ;;  %v3594_v6 = vld [vmem:[#allocation5 + $0x7f4] sm:$0xf] }
  0xd9   :  { %1992 = vmatpush.bf16.msra.mxu2 %v2955_v16  ;;  %1961 = vmatmul.bf16.vlgmr.msrb.gmra.mxu3 %v3817_v38  ;;  %v2803_v38 = vor.u32 %v3476_v9, %v2800_v15  ;;  %v2867_v40 = vor.u32 %v3492_v34, %v2864_v55  ;;  %v3488_v16 = vld [vmem:[#allocation5 + $0x4a4] sm:$0xf]  ;;  %v2787_v33 = vor.u32 %v3472_v12, %v2784_v14 }
  0xda   :  { %2005 = vmatpush.bf16.msra.mxu3 %v3019_v29  ;;  %v2912_v29 = vld [vmem:[#allocation5 + $0x528] sm:$0xf0]  ;;  %v2843_v9 = vor.u32 %v3486_v43, %v2840_v46  ;;  %v2907_v15 = vor.u32 %v3502_v47, %v2904_v48  ;;  %v3484_v34 = vld [vmem:[#allocation5 + $0x484] sm:$0xf]  ;;  %v3211_v14 = vor.u32 %v3578_v2, %v3208_v3  ;;  %v3064_v43 = vld [vmem:[#allocation5 + $0x658] sm:$0xf0] }
  0xdb   :  { %1967 = vmatpush.bf16.msra.mxu0 %v2819_v36  ;;  %v3866_v17 = vpop.f32.mrf.mxu2  ;;  %v1717_v35 = vpop.f32.mrf.mxu0  ;;  %v2851_v36 = vor.u32 %v3488_v16, %v2848_v24  ;;  %v3500_v55 = vld [vmem:[#allocation5 + $0x504] sm:$0xf]  ;;  %v3128_v46 = vld [vmem:[#allocation5 + $0x6d8] sm:$0xf0]  ;;  %v3574_v47 = vld [vmem:[#allocation5 + $0x754] sm:$0xf] }
  0xdc   :  { %1980 = vmatpush.bf16.msra.mxu1 %v2883_v39  ;;  %v3868_v30 = vpop.f32.mrf.mxu3  ;;  %v2915_v39 = vor.u32 %v3504_v28, %v2912_v29  ;;  %v1730_v44 = vpop.f32.mrf.mxu1  ;;  %v2899_v5 = vor.u32 %v3500_v55, %v2896_v58  ;;  %v3544_v16 = vld [vmem:[#allocation5 + $0x664] sm:$0xf]  ;;  %v3136_v29 = vld [vmem:[#allocation5 + $0x6e8] sm:$0xf0]  ;;  %v3192_v48 = vld [vmem:[#allocation5 + $0x758] sm:$0xf0] }
  0xdd   :  { %1993 = vmatpush.bf16.msra.mxu2 %v2947_v41  ;;  %v3470_v41 = vld [vmem:[#allocation5 + $0x414] sm:$0xf]  ;;  %v3560_v24 = vld [vmem:[#allocation5 + $0x6e4] sm:$0xf]  ;;  %v3264_v35 = vld [vmem:[#allocation5 + $0x7e8] sm:$0xf0] }
  0xde   :  { %2006 = vmatpush.bf16.msra.mxu3 %v3011_v45  ;;  %v2979_v45 = vor.u32 %v3520_v31, %v2976_v32  ;;  %v3576_v31 = vld [vmem:[#allocation5 + $0x764] sm:$0xf]  ;;  %v3200_v32 = vld [vmem:[#allocation5 + $0x768] sm:$0xf0]  ;;  %v3558_v44 = vld [vmem:[#allocation5 + $0x6d4] sm:$0xf] }
  0xdf   :  { %1968 = vmatpush.bf16.msra.mxu0 %v2811_v8  ;;  %v2779_v8 = vor.u32 %v3470_v41, %v2776_v42  ;;  %v3203_v41 = vor.u32 %v3576_v31, %v3200_v32  ;;  %v3542_v42 = vld [vmem:[#allocation5 + $0x654] sm:$0xf]  ;;  %v3572_v55 = vld [vmem:[#allocation5 + $0x744] sm:$0xf]  ;;  %v3176_v2 = vld [vmem:[#allocation5 + $0x738] sm:$0xf0] }
  0xe0   :  { %1981 = vmatpush.bf16.msra.mxu1 %v2875_v51  ;;  %v3468_v51 = vld [vmem:[#allocation5 + $0x404] sm:$0xf]  ;;  %v3586_v3 = vld [vmem:[#allocation5 + $0x7b4] sm:$0xf] }
  0xe1   :  { %1994 = vmatpush.bf16.msra.mxu2 %v2939_v52  ;;  %v2768_v52 = vld [vmem:[#allocation5 + $0x408] sm:$0xf0]  ;;  %v3584_v32 = vld [vmem:[#allocation5 + $0x7a4] sm:$0xf] }
  0xe2   :  { %2007 = vmatpush.bf16.msra.mxu3 %v3003_v54  ;;  %v2832_v54 = vld [vmem:[#allocation5 + $0x488] sm:$0xf0]  ;;  %v2771_v63 = vor.u32 %v3468_v51, %v2768_v52  ;;  %v3131_v51 = vor.u32 %v3558_v44, %v3128_v46  ;;  %v3195_v52 = vor.u32 %v3574_v47, %v3192_v48  ;;  %v3032_v44 = vld [vmem:[#allocation5 + $0x618] sm:$0xf0]  ;;  %v3566_v48 = vld [vmem:[#allocation5 + $0x714] sm:$0xf] }
  0xe3   :  { %1969 = vmatpush.bf16.msra.mxu0 %v2803_v38  ;;  %v1743_v56 = vpop.f32.mrf.mxu2  ;;  %v2960_v38 = vld [vmem:[#allocation5 + $0x588] sm:$0xf0]  ;;  %v2835_v4 = vor.u32 %v3484_v34, %v2832_v54  ;;  %v3259_v34 = vor.u32 %v3590_v49, %v3256_v50  ;;  %v3096_v47 = vld [vmem:[#allocation5 + $0x698] sm:$0xf0]  ;;  %v3582_v49 = vld [vmem:[#allocation5 + $0x794] sm:$0xf] }
  0xe4   :  { %1982 = vmatpush.bf16.msra.mxu1 %v2867_v40  ;;  %v1756_v40 = vpop.f32.mrf.mxu3  ;;  %v3120_v54 = vld [vmem:[#allocation5 + $0x6c8] sm:$0xf0]  ;;  %v3224_v50 = vld [vmem:[#allocation5 + $0x798] sm:$0xf0] }
  0xe5   :  { %1995 = vmatpush.bf16.msra.mxu2 %v2931_v60  ;;  %v3546_v60 = vld [vmem:[#allocation5 + $0x674] sm:$0xf] }
  0xe6   :  { %2008 = vmatpush.bf16.msra.mxu3 %v2995_v1  ;;  %v3144_v1 = vld [vmem:[#allocation5 + $0x6f8] sm:$0xf0]  ;;  %v3538_v40 = vld [vmem:[#allocation5 + $0x634] sm:$0xf] }
  0xe7   :  { %1970 = vmatpush.bf16.msra.mxu0 %v2795_v7  ;;  %v3272_v7 = vld [vmem:[#allocation5 + $0x7f8] sm:$0xf0]  ;;  %v3147_v12 = vor.u32 %v3562_v62, %v3144_v1  ;;  %v3570_v1 = vld [vmem:[#allocation5 + $0x734] sm:$0xf] }
  0xe8   :  { %1983 = vmatpush.bf16.msra.mxu1 %v2859_v10  ;;  %v2963_v10 = vor.u32 %v3516_v37, %v2960_v38  ;;  %v3275_v28 = vor.u32 %v3594_v6, %v3272_v7  ;;  %v3179_v7 = vor.u32 %v3570_v1, %v3176_v2 }
  0xe9   :  { %1996 = vmatpush.bf16.msra.mxu2 %v2923_v11  ;;  %v3083_v11 = vor.u32 %v3546_v60, %v3080_v61  ;;  %v3048_v60 = vld [vmem:[#allocation5 + $0x638] sm:$0xf0]  ;;  %v3554_v61 = vld [vmem:[#allocation5 + $0x6b4] sm:$0xf] }
  0xea   :  { %2009 = vmatpush.bf16.msra.mxu3 %v2987_v21  ;;  %v3072_v21 = vld [vmem:[#allocation5 + $0x668] sm:$0xf0] }
  0xeb   :  { %1971 = vmatpush.bf16.msra.mxu0 %v2787_v33  ;;  %v3592_v33 = vld [vmem:[#allocation5 + $0x7e4] sm:$0xf] }
  0xec   :  { %1984 = vmatpush.bf16.msra.mxu1 %v2851_v36  ;;  %v3075_v36 = vor.u32 %v3544_v16, %v3072_v21  ;;  %v3104_v21 = vld [vmem:[#allocation5 + $0x6a8] sm:$0xf0] }
  0xed   :  { %1997 = vmatpush.bf16.msra.mxu2 %v2915_v39  ;;  %v3139_v39 = vor.u32 %v3560_v24, %v3136_v29  ;;  %v3568_v24 = vld [vmem:[#allocation5 + $0x724] sm:$0xf]  ;;  %v1716_v29 = vadd.f32 %v3862_v59, %v3856_v25  ;;  %v3160_v25 = vld [vmem:[#allocation5 + $0x718] sm:$0xf0] }
  0xee   :  { %2010 = vmatpush.bf16.msra.mxu3 %v2979_v45  ;;  %v3267_v45 = vor.u32 %v3592_v33, %v3264_v35  ;;  %v3232_v33 = vld [vmem:[#allocation5 + $0x7a8] sm:$0xf0] }
  0xef   :  { %1972 = vmatpush.bf16.msra.mxu0 %v2779_v8  ;;  %v3067_v8 = vor.u32 %v3542_v42, %v3064_v43  ;;  %v3534_v43 = vld [vmem:[#allocation5 + $0x614] sm:$0xf]  ;;  %v3235_v46 = vor.u32 %v3584_v32, %v3232_v33  ;;  %v1729_v59 = vadd.f32 %v3864_v0, %v1716_v29  ;;  %v3580_v0 = vld [vmem:[#allocation5 + $0x784] sm:$0xf]  ;;  %v371_v32 = vperm.slane %v3853_v53, 1 }
  0xf0   :  { %1985 = vmatpush.bf16.msra.mxu1 %v2843_v9  ;;  %v3540_v9 = vld [vmem:[#allocation5 + $0x644] sm:$0xf]  ;;  %v3610_v53 = vld [vmem:[#allocation8 + $0x70] sm:$0xff] }
  0xf1   :  { %1998 = vmatpush.bf16.msra.mxu2 %v2907_v15  ;;  %v3556_v15 = vld [vmem:[#allocation5 + $0x6c4] sm:$0xf] }
  0xf2   :  { %2011 = vmatpush.bf16.msra.mxu3 %v2971_v57  ;;  %v3248_v57 = vld [vmem:[#allocation5 + $0x7c8] sm:$0xf0]  ;;  %v3123_v37 = vor.u32 %v3556_v15, %v3120_v54  ;;  %v3548_v15 = vld [vmem:[#allocation5 + $0x684] sm:$0xf] }
  0xf3   :  { %1973 = vmatpush.bf16.msra.mxu0 %v2771_v63  ;;  %v3874_v56 = vpop.f32.mrf.mxu0  ;;  %v3112_v63 = vld [vmem:[#allocation5 + $0x6b8] sm:$0xf0]  ;;  %v3088_v54 = vld [vmem:[#allocation5 + $0x688] sm:$0xf0] }
  0xf4   :  { %1986 = vmatpush.bf16.msra.mxu1 %v2835_v4  ;;  %v3876_v58 = vpop.f32.mrf.mxu1  ;;  %v3240_v4 = vld [vmem:[#allocation5 + $0x7b8] sm:$0xf0]  ;;  %v3115_v6 = vor.u32 %v3554_v61, %v3112_v63 }
  0xf5   :  { %1999 = vmatpush.bf16.msra.mxu2 %v2899_v5  ;;  %v3051_v5 = vor.u32 %v3538_v40, %v3048_v60  ;;  %v3091_v40 = vor.u32 %v3548_v15, %v3088_v54  ;;  %v3607_v54 = vld [vmem:[#allocation8 + $0x58] sm:$0xff] }
  0xf6   :  { %2012 = vmatpush.bf16.msra.mxu3 %v2963_v10  ;;  %1974 = vmatmul.bf16.vlgmr.msra.gmra.mxu0 %v3825_v18  ;;  %v3056_v18 = vld [vmem:[#allocation5 + $0x648] sm:$0xf0]  ;;  %v3536_v10 = vld [vmem:[#allocation5 + $0x624] sm:$0xf] }
  0xf7   :  { %2018 = vmatpush.bf16.msrb.mxu0 %v3083_v11  ;;  %1987 = vmatmul.bf16.vlgmr.msra.gmra.mxu1 %v3829_v23  ;;  %v3588_v23 = vld [vmem:[#allocation5 + $0x7c4] sm:$0xf]  ;;  %v3040_v11 = vld [vmem:[#allocation5 + $0x628] sm:$0xf0] }
  0xf8   :  { %2031 = vmatpush.bf16.msrb.mxu1 %v3147_v12  ;;  %2000 = vmatmul.bf16.vlgmr.msra.gmra.mxu2 %v3827_v22  ;;  %v3184_v22 = vld [vmem:[#allocation5 + $0x748] sm:$0xf0]  ;;  %v3251_v62 = vor.u32 %v3588_v23, %v3248_v57  ;;  %v3552_v12 = vld [vmem:[#allocation5 + $0x6a4] sm:$0xf]  ;;  %v1742_v57 = vadd.f32 %v3866_v17, %v1729_v59  ;;  %v3602_v17 = vld [vmem:[#allocation8 + $0x30] sm:$0xff] }
  0xf9   :  { %2044 = vmatpush.bf16.msrb.mxu2 %v3211_v14  ;;  %2013 = vmatmul.bf16.vlgmr.msra.gmra.mxu3 %v3831_v27  ;;  %v3059_v27 = vor.u32 %v3540_v9, %v3056_v18  ;;  %v3187_v38 = vor.u32 %v3572_v55, %v3184_v22  ;;  %v3243_v14 = vor.u32 %v3586_v3, %v3240_v4  ;;  %v3532_v9 = vld [vmem:[#allocation5 + $0x604] sm:$0xf]  ;;  %v3024_v18 = vld [vmem:[#allocation5 + $0x608] sm:$0xf0] }
  0xfa   :  { %2057 = vmatpush.bf16.msrb.mxu3 %v3275_v28  ;;  %v3168_v28 = vld [vmem:[#allocation5 + $0x728] sm:$0xf0]  ;;  %v3564_v55 = vld [vmem:[#allocation5 + $0x704] sm:$0xf]  ;;  %v1755_v63 = vadd.f32 %v3868_v30, %v1742_v57 }
  0xfb   :  { %2019 = vmatpush.bf16.msrb.mxu0 %v3075_v36  ;;  %v3878_v16 = vpop.f32.mrf.mxu2  ;;  %v1769_v35 = vpop.f32.mrf.mxu0  ;;  %v3043_v36 = vor.u32 %v3536_v10, %v3040_v11  ;;  %v3171_v42 = vor.u32 %v3568_v24, %v3168_v28  ;;  %v3152_v22 = vld [vmem:[#allocation5 + $0x708] sm:$0xf0]  ;;  %v3600_v4 = vld [vmem:[#allocation8 + $0x20] sm:$0xff] }
  0xfc   :  { %2032 = vmatpush.bf16.msrb.mxu1 %v3139_v39  ;;  %v3882_v31 = vpop.f32.mrf.mxu3  ;;  %v1782_v39 = vpop.f32.mrf.mxu1  ;;  %v3155_v60 = vor.u32 %v3564_v55, %v3152_v22  ;;  %v1768_v1 = vadd.f32 %v3874_v56, %v1755_v63  ;;  %v3601_v30 = vld [vmem:[#allocation8 + $0x28] sm:$0xff]  ;;  %v3596_v28 = vld [vmem:[#allocation8] sm:$0xff]  ;;  %v3606_v22 = vld [vmem:[#allocation8 + $0x50] sm:$0xff] }
  0xfd   :  { %2045 = vmatpush.bf16.msrb.mxu2 %v3203_v41  ;;  %v3107_v41 = vor.u32 %v3552_v12, %v3104_v21 }
  0xfe   :  { %2058 = vmatpush.bf16.msrb.mxu3 %v3267_v45  ;;  %v3550_v45 = vld [vmem:[#allocation5 + $0x694] sm:$0xf]  ;;  %v1781_v2 = vadd.f32 %v3876_v58, %v1768_v1 }
  0xff   :  { %2020 = vmatpush.bf16.msrb.mxu0 %v3067_v8  ;;  %v3035_v8 = vor.u32 %v3534_v43, %v3032_v44  ;;  %v3598_v58 = vld [vmem:[#allocation8 + $0x10] sm:$0xff] }
 0x100   :  { %2033 = vmatpush.bf16.msrb.mxu1 %v3131_v51  ;;  %v3099_v51 = vor.u32 %v3550_v45, %v3096_v47  ;;  %v1794_v3 = vadd.f32 %v3878_v16, %v1781_v2 }
 0x101   :  { %2046 = vmatpush.bf16.msrb.mxu2 %v3195_v52  ;;  %v3163_v52 = vor.u32 %v3566_v48, %v3160_v25 }
 0x102   :  { %2059 = vmatpush.bf16.msrb.mxu3 %v3259_v34  ;;  %v3227_v34 = vor.u32 %v3582_v49, %v3224_v50 }
 0x103   :  { %2021 = vmatpush.bf16.msrb.mxu0 %v3059_v27  ;;  %v1795_v23 = vpop.f32.mrf.mxu2  ;;  %v3216_v27 = vld [vmem:[#allocation5 + $0x788] sm:$0xf0] }
 0x104   :  { %2034 = vmatpush.bf16.msrb.mxu1 %v3123_v37  ;;  %v1808_v37 = vpop.f32.mrf.mxu3  ;;  %v3219_v61 = vor.u32 %v3580_v0, %v3216_v27  ;;  %v3605_v0 = vld [vmem:[#allocation8 + $0x48] sm:$0xff] }
 0x105   :  { %2047 = vmatpush.bf16.msrb.mxu2 %v3187_v38  ;;  %v3027_v38 = vor.u32 %v3532_v9, %v3024_v18  ;;  %v3609_v18 = vld [vmem:[#allocation8 + $0x68] sm:$0xff] }
 0x106   :  { %2060 = vmatpush.bf16.msrb.mxu3 %v3251_v62  ;;  %v3603_v62 = vld [vmem:[#allocation8 + $0x38] sm:$0xff] }
 0x107   :  { %2022 = vmatpush.bf16.msrb.mxu0 %v3051_v5 }
 0x108   :  { %2035 = vmatpush.bf16.msrb.mxu1 %v3115_v6  ;;  %v1807_v6 = vadd.f32 %v3882_v31, %v1794_v3 }
 0x109   :  { %2048 = vmatpush.bf16.msrb.mxu2 %v3179_v7 }
 0x10a   :  { %2061 = vmatpush.bf16.msrb.mxu3 %v3243_v14  ;;  %v3597_v14 = vld [vmem:[#allocation8 + $0x8] sm:$0xff] }
 0x10b   :  { %2023 = vmatpush.bf16.msrb.mxu0 %v3043_v36 }
 0x10c   :  { %2036 = vmatpush.bf16.msrb.mxu1 %v3107_v41 }
 0x10d   :  { %2049 = vmatpush.bf16.msrb.mxu2 %v3171_v42 }
 0x10e   :  { %2062 = vmatpush.bf16.msrb.mxu3 %v3235_v46 }
 0x10f   :  { %2024 = vmatpush.bf16.msrb.mxu0 %v3035_v8  ;;  %v3611_v8 = vld [vmem:[#allocation8 + $0x78] sm:$0xff] }
 0x110   :  { %2037 = vmatpush.bf16.msrb.mxu1 %v3099_v51 }
 0x111   :  { %2050 = vmatpush.bf16.msrb.mxu2 %v3163_v52 }
 0x112   :  { %2063 = vmatpush.bf16.msrb.mxu3 %v3227_v34  ;;  %v3608_v34 = vld [vmem:[#allocation8 + $0x60] sm:$0xff] }
 0x113   :  { %2025 = vmatpush.bf16.msrb.mxu0 %v3027_v38  ;;  %v1819_v56 = vpop.f32.mrf.mxu0 }
 0x114   :  { %2038 = vmatpush.bf16.msrb.mxu1 %v3091_v40  ;;  %v1832_v5 = vpop.f32.mrf.mxu1  ;;  %v1820_v7 = vadd.f32 %v1819_v56, %v1807_v6 }
 0x115   :  { %2051 = vmatpush.bf16.msrb.mxu2 %v3155_v60 }
 0x116   :  { %2064 = vmatpush.bf16.msrb.mxu3 %v3219_v61  ;;  %2026 = vmatmul.bf16.vlgmr.msrb.gmra.mxu0 %v3837_v13  ;;  %v3599_v13 = vld [vmem:[#allocation8 + $0x18] sm:$0xff]  ;;  %v1833_v10 = vadd.f32 %v1832_v5, %v1820_v7  ;;  %v3604_v61 = vld [vmem:[#allocation8 + $0x40] sm:$0xff] }
 0x117   :  { %2206 = vmatpush.bf16.msra.mxu0 %v3603_v62  ;;  %2039 = vmatmul.bf16.vlgmr.msrb.gmra.mxu1 %v3841_v20 }
 0x118   :  { %2052 = vmatmul.bf16.vlgmr.msrb.gmra.mxu2 %v3839_v19  ;;  %2219 = vmatpush.bf16.msra.mxu1 %v3611_v8 }
 0x119   :  { %2065 = vmatmul.bf16.vlgmr.msrb.gmra.mxu3 %v3843_v26 }
 0x11b   :  { %2207 = vmatpush.bf16.msra.mxu0 %v3602_v17  ;;  %v1845_v20 = vpop.f32.mrf.mxu2  ;;  %v1821_v11 = vpop.f32.mrf.mxu0 }
 0x11c   :  { %v1858_v19 = vpop.f32.mrf.mxu3  ;;  %v1834_v26 = vpop.f32.mrf.mxu1  ;;  %v1846_v12 = vadd.f32 %v1845_v20, %v1833_v10  ;;  %2220 = vmatpush.bf16.msra.mxu1 %v3610_v53 }
 0x11e   :  { %v1859_v16 = vadd.f32 %v1858_v19, %v1846_v12 }
 0x11f   :  { %2208 = vmatpush.bf16.msra.mxu0 %v3601_v30 }
 0x120   :  { %v2070_v29 = vmax.f32 %v1859_v16, 0.0  ;;  %2221 = vmatpush.bf16.msra.mxu1 %v3609_v18 }
 0x122   :  { %v2072_v31 = vpack.c.bf16 %v2070_v29, %v2070_v29 }
 0x123   :  { %2209 = vmatpush.bf16.msra.mxu0 %v3600_v4  ;;  %v1847_v21 = vpop.f32.mrf.mxu2 }
 0x124   :  { %v1860_v24 = vpop.f32.mrf.mxu3  ;;  %2222 = vmatpush.bf16.msra.mxu1 %v3608_v34 }
 0x127   :  { %2210 = vmatpush.bf16.msra.mxu0 %v3599_v13 }
 0x128   :  { %2223 = vmatpush.bf16.msra.mxu1 %v3607_v54 }
 0x12b   :  { %2211 = vmatpush.bf16.msra.mxu0 %v3598_v58 }
 0x12c   :  { %2224 = vmatpush.bf16.msra.mxu1 %v3606_v22 }
 0x12f   :  { %2212 = vmatpush.bf16.msra.mxu0 %v3597_v14 }
 0x130   :  { %2225 = vmatpush.bf16.msra.mxu1 %v3605_v0 }
 0x133   :  { %2213 = vmatpush.bf16.msra.mxu0 %v3596_v28  ;;  %v1871_v33 = vpop.f32.mrf.mxu0  ;;  %v3621_v28 = vld [vmem:[%s3906_s4] ss:$0 sm:$0xff] }
 0x134   :  { %v1872_v35 = vadd.f32 %v1871_v33, %v371_v32  ;;  %v1884_v36 = vpop.f32.mrf.mxu1  ;;  %2226 = vmatpush.bf16.msra.mxu1 %v3604_v61 }
 0x136   :  { %2214 = vmatmul.bf16.vlgmr.msra.gmra.mxu0 %v2072_v31  ;;  %v1885_v39 = vadd.f32 %v1884_v36, %v1872_v35 }
 0x13b   :  { %v1897_v41 = vpop.f32.mrf.mxu2  ;;  %v1873_v45 = vpop.f32.mrf.mxu0 }
 0x13c   :  { %v1898_v42 = vadd.f32 %v1897_v41, %v1885_v39  ;;  %v1910_v43 = vpop.f32.mrf.mxu3  ;;  %v1886_v46 = vpop.f32.mrf.mxu1 }
 0x13e   :  { %v1911_v44 = vadd.f32 %v1910_v43, %v1898_v42 }
 0x143   :  { %v1899_v47 = vpop.f32.mrf.mxu2 }
 0x144   :  { %v1912_v48 = vpop.f32.mrf.mxu3 }
 0x153   :  { %v1923_v25 = vpop.f32.mrf.mxu0 }
 0x154   :  { %v1936_v59 = vpop.f32.mrf.mxu1  ;;  %v1924_v57 = vadd.f32 %v1923_v25, %v1911_v44 }
 0x156   :  { %v1937_v40 = vadd.f32 %v1936_v59, %v1924_v57 }
 0x15b   :  { %v1949_v49 = vpop.f32.mrf.mxu2  ;;  %v1925_v51 = vpop.f32.mrf.mxu0 }
 0x15c   :  { %v1962_v50 = vpop.f32.mrf.mxu3  ;;  %v1938_v52 = vpop.f32.mrf.mxu1  ;;  %v1950_v62 = vadd.f32 %v1949_v49, %v1937_v40 }
 0x15e   :  { %v1963_v17 = vadd.f32 %v1962_v50, %v1950_v62 }
 0x163   :  { %v1951_v9 = vpop.f32.mrf.mxu2 }
 0x164   :  { %v1964_v15 = vpop.f32.mrf.mxu3 }
 0x173   :  { %v1975_v55 = vpop.f32.mrf.mxu0 }
 0x174   :  { %v1988_v23 = vpop.f32.mrf.mxu1  ;;  %v1976_v2 = vadd.f32 %v1975_v55, %v1963_v17 }
 0x176   :  { %v1989_v30 = vadd.f32 %v1988_v23, %v1976_v2 }
 0x17b   :  { %v2001_v27 = vpop.f32.mrf.mxu2  ;;  %v1977_v38 = vpop.f32.mrf.mxu0 }
 0x17c   :  { %v2014_v37 = vpop.f32.mrf.mxu3  ;;  %v1990_v60 = vpop.f32.mrf.mxu1  ;;  %v2002_v3 = vadd.f32 %v2001_v27, %v1989_v30 }
 0x17e   :  { %v2015_v56 = vadd.f32 %v2014_v37, %v2002_v3 }
 0x183   :  { %v2003_v63 = vpop.f32.mrf.mxu2 }
 0x184   :  { %v2016_v1 = vpop.f32.mrf.mxu3 }
 0x193   :  { %v2027_v4 = vpop.f32.mrf.mxu0 }
 0x194   :  { %v2040_v5 = vpop.f32.mrf.mxu1  ;;  %v2028_v6 = vadd.f32 %v2027_v4, %v2015_v56 }
 0x196   :  { %v2041_v7 = vadd.f32 %v2040_v5, %v2028_v6 }
 0x19b   :  { %v2053_v13 = vpop.f32.mrf.mxu2  ;;  %v2029_v19 = vpop.f32.mrf.mxu0 }
 0x19c   :  { %v2054_v20 = vadd.f32 %v2053_v13, %v2041_v7  ;;  %v2066_v10 = vpop.f32.mrf.mxu3  ;;  %v2042_v11 = vpop.f32.mrf.mxu1 }
 0x19e   :  { %v2067_v58 = vadd.f32 %v2066_v10, %v2054_v20 }
 0x1a0   :  { %v2071_v26 = vmax.f32 %v2067_v58, 0.0 }
 0x1a2   :  { %v2073_v12 = vpack.c.bf16 %v2071_v26, %v2071_v26 }
 0x1a3   :  { %v2055_v14 = vpop.f32.mrf.mxu2 }
 0x1a4   :  { %v2068_v16 = vpop.f32.mrf.mxu3  ;;  %2227 = vmatmul.bf16.vlgmr.msra.gmra.mxu1 %v2073_v12 }
 0x1b3   :  { %v2215_v21 = vpop.f32.mrf.mxu0 }
 0x1b4   :  { %v2216_v29 = vadd.f32 %v3621_v28, %v2215_v21 }
 0x1bb   :  { %v2217_v24 = vpop.f32.mrf.mxu0 }
 0x221   :  { %v2228_v31 = vpop.f32.mrf.mxu1 }
 0x222   :  { %v2229_v32 = vadd.f32 %v2228_v31, %v2216_v29 }
 0x224   :  { %2232 = vst [vmem:[#allocation10] sm:$0xff] %v2229_v32 }
 0x225   :  { %2243 = dma.vmem_to_hbm [thread:$0]  %s2239_s16, 128, %s2241_s19, [#allocation4]  }
 0x229   :  { %v2230_v33 = vpop.f32.mrf.mxu1 }
 0x22a   :  { %3748 = dma.done.wait [#allocation4], 128  }
 0x22b   :  { %3749 = vsyncadd [#allocation4], 4294967168 }
 0x22c   :  { %2248 = vsyncpa [#allocation3], 1 }
 0x22d   :  { %2249 = vsyncpa [#allocation6], 1 }
 0x22e   :  { %2250 = vsyncpa [#allocation9], 1 }
 0x22f   :  { %2251 = vsyncpa [#allocation4], 1 }

</bundles_post_ra>
